<compile_context>
chip_gen: v5e
topology: v5e:2x2
jax: 0.10.0
libtpu: 0.0.40
codegen_flags: <defaults>
</compile_context>

<pallas_src>
import jax
import jax.numpy as jnp
from jax import lax
from jax.experimental import pallas as pl
from jax.experimental.pallas import tpu as pltpu

BN_EPS = 1e-5


def _round_up(x, m):
    return (x + m - 1) // m * m


def _compiler_params(dimension_semantics):
    cls = getattr(pltpu, "CompilerParams", None)
    if cls is None:  # very old JAX fallback
        cls = getattr(pltpu, "TPUCompilerParams")
    return cls(dimension_semantics=dimension_semantics)


def _fold_bn(conv_w_oihw, bn):
    """Fold eval-mode BatchNorm into conv weight + bias (f32)."""
    gamma, beta, mean, var = bn
    scale = gamma / jnp.sqrt(var + BN_EPS)               # (Cout,)
    w = conv_w_oihw * scale[:, None, None, None]
    b = beta - mean * scale
    return w, b


def _pick_k_tile(kp):
    if kp <= 512:
        return kp
    for cand in (512, 384, 256, 128):
        if kp % cand == 0:
            return cand
    return 128


# ---------------------------------------------------------------------------
# Generic tiled GEMM + bias + ReLU (conv1 / fused conv2 branches / downsample)
# ---------------------------------------------------------------------------
def _matmul_bias_relu_kernel(x_ref, w_ref, b_ref, o_ref, acc_ref):
    k = pl.program_id(2)

    @pl.when(k == 0)
    def _init():
        acc_ref[...] = jnp.zeros_like(acc_ref)

    acc_ref[...] += jnp.dot(x_ref[...], w_ref[...],
                            preferred_element_type=jnp.float32)

    @pl.when(k == pl.num_programs(2) - 1)
    def _epilogue():
        o_ref[...] = jnp.maximum(acc_ref[...] + b_ref[...], 0.0).astype(o_ref.dtype)


def _gemm_bias_relu(a, w_mat, bias, out_dtype=jnp.bfloat16):
    """relu(a @ w_mat + bias); returns the (M_pad, C_pad) channel-padded result.

    a: (M, K); w_mat: (K, C) f32; bias: (C,) f32.  Operands cast to bf16,
    accumulation in f32.
    """
    M, K = a.shape
    C = w_mat.shape[1]

    kp = _round_up(K, 128)
    cp = _round_up(C, 128)
    tk = _pick_k_tile(kp)
    tn = 256 if cp % 256 == 0 else 128
    tm = min(512, _round_up(M, 8))
    mp = _round_up(M, tm)
    # Keep >= 2 parallel output blocks when possible (v7x: 2 TensorCores/chip).
    if (mp // tm) * (cp // tn) < 2 and tm >= 16 and tm % 16 == 0:
        tm //= 2
        mp = _round_up(M, tm)

    a_p = jnp.pad(a.astype(jnp.bfloat16), ((0, mp - M), (0, kp - K)))
    w_p = jnp.pad(w_mat.astype(jnp.bfloat16), ((0, kp - K), (0, cp - C)))
    b_p = jnp.pad(bias.astype(jnp.float32), (0, cp - C)).reshape(1, cp)

    grid = (mp // tm, cp // tn, kp // tk)                  # K reduction last
    out = pl.pallas_call(
        _matmul_bias_relu_kernel,
        out_shape=jax.ShapeDtypeStruct((mp, cp), out_dtype),
        grid=grid,
        in_specs=[pl.BlockSpec((tm, tk), lambda i, j, k: (i, k)),
                  pl.BlockSpec((tk, tn), lambda i, j, k: (k, j)),
                  pl.BlockSpec((1, tn), lambda i, j, k: (0, j))],
        out_specs=pl.BlockSpec((tm, tn), lambda i, j, k: (i, j)),
        scratch_shapes=[pltpu.VMEM((tm, tn), jnp.float32)],
        compiler_params=_compiler_params(("parallel", "parallel", "arbitrary")),
    )(a_p, w_p, b_p)
    return out


# ---------------------------------------------------------------------------
# conv3 fused with the gated branch sum + residual add + final ReLU
# ---------------------------------------------------------------------------
def _gated_matmul_residual_kernel(x_ref, g_ref, w_ref, b_ref, r_ref, o_ref, acc_ref):
    k = pl.program_id(3)

    @pl.when(k == 0)
    def _init():
        acc_ref[...] = jnp.zeros_like(acc_ref)

    # Per-image channel gates applied to the K tile of concatenated branches:
    # x2 = sum_i gate_i * x2_i is formed in VMEM and never hits HBM.
    a = x_ref[...].astype(jnp.float32) * g_ref[...]                 # (tm, tk)
    acc_ref[...] += jnp.dot(a.astype(jnp.bfloat16), w_ref[...],
                            preferred_element_type=jnp.float32)

    @pl.when(k == pl.num_programs(3) - 1)
    def _epilogue():
        y = jnp.maximum(acc_ref[...] + b_ref[...], 0.0)             # conv3+BN+ReLU
        y = jnp.maximum(y + r_ref[...].astype(jnp.float32), 0.0)    # + identity, ReLU
        o_ref[...] = y.astype(o_ref.dtype)


def _gated_gemm_residual(xb3, gates_k, w3stack, bias3, iden3, out_dtype=jnp.float32):
    """relu(relu((xb3 * gates) @ w3stack + bias3) + iden3) per image.

    xb3: (N, HW, K) bf16 concatenated branch activations (channel-padded).
    gates_k: (N, 1, K) f32 per-image gates in the same channel layout.
    w3stack: (4*mid, Cout) f32 (conv3 weight stacked for the 4 branch groups).
    iden3: (N, HW, Cout_pad) residual.
    """
    N, HW, K = xb3.shape
    C = w3stack.shape[1]
    kp = _round_up(K, 128)
    cp = _round_up(C, 128)
    tk = _pick_k_tile(kp)
    tn = 256 if cp % 256 == 0 else 128
    tm = min(256, _round_up(HW, 8))
    hwp = _round_up(HW, tm)

    xb_p = jnp.pad(xb3, ((0, 0), (0, hwp - HW), (0, kp - K)))
    g_p = jnp.pad(gates_k.astype(jnp.float32), ((0, 0), (0, 0), (0, kp - K)))
    w_p = jnp.pad(w3stack.astype(jnp.bfloat16),
                  ((0, kp - w3stack.shape[0]), (0, cp - C)))
    b_p = jnp.pad(bias3.astype(jnp.float32), (0, cp - C)).reshape(1, cp)
    r_p = jnp.pad(iden3, ((0, 0), (0, hwp - HW), (0, cp - iden3.shape[2])))

    grid = (N, hwp // tm, cp // tn, kp // tk)               # K reduction last
    out = pl.pallas_call(
        _gated_matmul_residual_kernel,
        out_shape=jax.ShapeDtypeStruct((N, hwp, cp), out_dtype),
        grid=grid,
        in_specs=[pl.BlockSpec((None, tm, tk), lambda n, m, j, k: (n, m, k)),
                  pl.BlockSpec((None, 1, tk), lambda n, m, j, k: (n, 0, k)),
                  pl.BlockSpec((tk, tn), lambda n, m, j, k: (k, j)),
                  pl.BlockSpec((1, tn), lambda n, m, j, k: (0, j)),
                  pl.BlockSpec((None, tm, tn), lambda n, m, j, k: (n, m, j))],
        out_specs=pl.BlockSpec((None, tm, tn), lambda n, m, j, k: (n, m, j)),
        scratch_shapes=[pltpu.VMEM((tm, tn), jnp.float32)],
        compiler_params=_compiler_params(
            ("parallel", "parallel", "parallel", "arbitrary")),
    )(xb_p, g_p, w_p, b_p, r_p)
    return out


# ---------------------------------------------------------------------------
# ChannelGate MLP: one pallas_call for all four branches (stacked pooled rows)
# ---------------------------------------------------------------------------
def _gate_mlp_kernel(p_ref, w1_ref, b1_ref, w2_ref, b2_ref, g_ref):
    h = jnp.dot(p_ref[...], w1_ref[...], preferred_element_type=jnp.float32)
    h = jnp.maximum(h + b1_ref[...], 0.0)
    g = jnp.dot(h, w2_ref[...], preferred_element_type=jnp.float32) + b2_ref[...]
    g_ref[...] = jax.nn.sigmoid(g).astype(g_ref.dtype)


def _gate_mlp(pooled_rows, params):
    """sigmoid(fc2(relu(fc1(pooled)))) for stacked (4N, mid) pooled rows."""
    w1, b1 = params["gate_fc1_w"], params["gate_fc1_b"]
    w2, b2 = params["gate_fc2_w"], params["gate_fc2_b"]
    cr, mid = w1.shape[0], w1.shape[1]
    rows = pooled_rows.shape[0]

    rp = _round_up(rows, 8)
    cp = _round_up(mid, 128)
    crp = _round_up(cr, 128)
    p_p = jnp.pad(pooled_rows.astype(jnp.float32), ((0, rp - rows), (0, cp - mid)))
    w1m = jnp.pad(w1.reshape(cr, mid).T, ((0, cp - mid), (0, crp - cr)))
    b1m = jnp.pad(b1, (0, crp - cr)).reshape(1, crp)
    w2m = jnp.pad(w2.reshape(mid, cr).T, ((0, crp - cr), (0, cp - mid)))
    b2m = jnp.pad(b2, (0, cp - mid)).reshape(1, cp)

    g = pl.pallas_call(
        _gate_mlp_kernel,
        out_shape=jax.ShapeDtypeStruct((rp, cp), jnp.float32),
    )(p_p, w1m, b1m, w2m, b2m)
    return g[:rows, :mid]


# ---------------------------------------------------------------------------
# OSBlock forward (matches the PyTorch module with IN=False, eval-mode BN)
# ---------------------------------------------------------------------------
def osblock_forward(x_nchw, params):
    N, Cin, H, W = x_nchw.shape
    mid = params["conv1_w"].shape[0]
    cout = params["conv3_w"].shape[0]
    HW = H * W
    M = N * HW
    C4 = 4 * mid
    C4p = _round_up(C4, 128)
    Cout_p = _round_up(cout, 128)

    x = jnp.transpose(x_nchw, (0, 2, 3, 1))                 # NCHW -> NHWC (f32)
    x_mat = x.reshape(M, Cin)

    # ---- conv1: 1x1 + BN + ReLU -> x1 (bf16, channels padded to 128) --------
    w1f, b1f = _fold_bn(params["conv1_w"], params["conv1_bn"])
    w1m = w1f.reshape(mid, Cin).T                           # (Cin, mid)
    x1 = _gemm_bias_relu(x_mat, w1m, b1f)[:M]               # (M, Cmid_pad) bf16

    # ---- conv2a..d fused into one 3x3-tap GEMM ------------------------------
    branch_defs = (("conv2a", (1, 1), (1, 1)),   # 1x1  -> centered 3x3 tap
                   ("conv2b", (0, 0), (0, 0)),   # 3x3  -> as is
                   ("conv2c", (1, 1), (0, 0)),   # 1x3  -> pad kh
                   ("conv2d", (0, 0), (1, 1)))   # 3x1  -> pad kw
    w_cols, b_parts = [], []
    for name, ph, pw in branch_defs:
        wf, bf = _fold_bn(params[name + "_w"], params[name + "_bn"])
        w3x3 = jnp.pad(wf, ((0, 0), (0, 0), ph, pw))                   # (mid,mid,3,3)
        w_cols.append(jnp.transpose(w3x3, (2, 3, 1, 0)).reshape(9 * mid, mid))
        b_parts.append(bf)
    w2m = jnp.concatenate(w_cols, axis=1)                              # (9*mid, 4*mid)
    b2v = jnp.concatenate(b_parts, axis=0)                             # (4*mid,)

    # im2col of x1 (stride 1, pad 1), built once for all four branches.
    x1_sp = x1[:, :mid].reshape(N, H, W, mid)
    x1_pad = jnp.pad(x1_sp, ((0, 0), (1, 1), (1, 1), (0, 0)))
    patches = jnp.concatenate(
        [x1_pad[:, dh:dh + H, dw:dw + W, :] for dh in range(3) for dw in range(3)],
        axis=-1).reshape(M, 9 * mid)
    xb = _gemm_bias_relu(patches, w2m, b2v)[:M]             # (M, C4p) bf16
    xb3 = xb.reshape(N, HW, C4p)

    # ---- ChannelGate: pool per branch, one MLP call, gates in K layout -------
    pooled = jnp.mean(xb3.astype(jnp.float32), axis=1)      # (N, C4p)
    pooled4 = pooled[:, :C4].reshape(N, 4, mid).reshape(4 * N, mid)
    gates4 = _gate_mlp(pooled4, params)                     # (4N, mid) f32
    gates_k = jnp.pad(gates4.reshape(N, C4), ((0, 0), (0, C4p - C4)))
    gates_k = gates_k.reshape(N, 1, C4p)

    # ---- identity / downsample path -----------------------------------------
    if "down_w" in params:
        wdf, bdf = _fold_bn(params["down_w"], params["down_bn"])
        wdm = wdf.reshape(cout, Cin).T
        iden = _gemm_bias_relu(x_mat, wdm, bdf)[:M]         # (M, Cout_p) bf16
    else:
        iden = jnp.pad(x_mat, ((0, 0), (0, Cout_p - Cin))).astype(jnp.bfloat16)
    iden3 = iden.reshape(N, HW, Cout_p)

    # ---- conv3 (1x1 + BN + ReLU) fused with gated sum + residual + ReLU -----
    w3f, b3f = _fold_bn(params["conv3_w"], params["conv3_bn"])
    w3m = w3f.reshape(cout, mid).T                          # (mid, cout)
    w3stack = jnp.concatenate([w3m] * 4, axis=0)            # (4*mid, cout)
    out3 = _gated_gemm_residual(xb3, gates_k, w3stack, b3f, iden3)

    out = out3[:, :HW, :cout].reshape(N, H, W, cout)
    return jnp.transpose(out, (0, 3, 1, 2)).astype(x_nchw.dtype)


# ---------------------------------------------------------------------------
# Parameter construction (PyTorch conventions: OIHW conv weights, BN stats)
# ---------------------------------------------------------------------------
def init_osblock_params(key, in_channels, out_channels, reduction=16):
    mid = out_channels // 4
    cr = mid // reduction
    assert cr >= 1

    def bn_params(k, c):
        k1, k2, k3, k4 = jax.random.split(k, 4)
        gamma = jax.random.uniform(k1, (c,), jnp.float32, 0.5, 1.5)
        beta = 0.1 * jax.random.normal(k2, (c,), jnp.float32)
        mean = 0.1 * jax.random.normal(k3, (c,), jnp.float32)
        var = jax.random.uniform(k4, (c,), jnp.float32, 0.5, 1.5)
        return (gamma, beta, mean, var)

    def conv_w(k, cout, cin, kh, kw):
        fan_in = cin * kh * kw
        return jax.random.normal(k, (cout, cin, kh, kw), jnp.float32) * (2.0 / fan_in) ** 0.5

    keys = jax.random.split(key, 18)
    p = {}
    p["conv1_w"] = conv_w(keys[0], mid, in_channels, 1, 1)
    p["conv1_bn"] = bn_params(keys[1], mid)
    p["conv2a_w"] = conv_w(keys[2], mid, mid, 1, 1)
    p["conv2a_bn"] = bn_params(keys[3], mid)
    p["conv2b_w"] = conv_w(keys[4], mid, mid, 3, 3)
    p["conv2b_bn"] = bn_params(keys[5], mid)
    p["conv2c_w"] = conv_w(keys[6], mid, mid, 1, 3)
    p["conv2c_bn"] = bn_params(keys[7], mid)
    p["conv2d_w"] = conv_w(keys[8], mid, mid, 3, 1)
    p["conv2d_bn"] = bn_params(keys[9], mid)
    p["gate_fc1_w"] = conv_w(keys[10], cr, mid, 1, 1)
    p["gate_fc1_b"] = 0.1 * jax.random.normal(keys[11], (cr,), jnp.float32)
    p["gate_fc2_w"] = conv_w(keys[12], mid, cr, 1, 1)
    p["gate_fc2_b"] = 0.1 * jax.random.normal(keys[13], (mid,), jnp.float32)
    p["conv3_w"] = conv_w(keys[14], out_channels, mid, 1, 1)
    p["conv3_bn"] = bn_params(keys[15], out_channels)
    if in_channels != out_channels:
        p["down_w"] = conv_w(keys[16], out_channels, in_channels, 1, 1)
        p["down_bn"] = bn_params(keys[17], out_channels)
    return p


# ---------------------------------------------------------------------------
# Pure-JAX f32 reference (mirrors the PyTorch forward) for correctness check
# ---------------------------------------------------------------------------
def _conv_bn_relu_ref(x_nchw, w, bn, padding=(0, 0)):
    gamma, beta, mean, var = bn
    y = lax.conv_general_dilated(
        x_nchw, w, window_strides=(1, 1),
        padding=[(padding[0], padding[0]), (padding[1], padding[1])],
        dimension_numbers=("NCHW", "OIHW", "NCHW"))
    y = (y - mean[None, :, None, None]) * (
        gamma[None, :, None, None] / jnp.sqrt(var[None, :, None, None] + BN_EPS))
    y = y + beta[None, :, None, None]
    return jnp.maximum(y, 0.0)


def _gate_ref(x_nchw, gate_p):
    w1, b1, w2, b2 = gate_p
    c = x_nchw.shape[1]
    cr = w1.shape[0]
    pooled = jnp.mean(x_nchw, axis=(2, 3))
    h = jnp.maximum(pooled @ w1.reshape(cr, c).T + b1, 0.0)
    g = jax.nn.sigmoid(h @ w2.reshape(c, cr).T + b2)
    return x_nchw * g[:, :, None, None]


def osblock_ref(x_nchw, params):
    x1 = _conv_bn_relu_ref(x_nchw, params["conv1_w"], params["conv1_bn"])
    x2a = _conv_bn_relu_ref(x1, params["conv2a_w"], params["conv2a_bn"])
    x2b = _conv_bn_relu_ref(x1, params["conv2b_w"], params["conv2b_bn"], (1, 1))
    x2c = _conv_bn_relu_ref(x1, params["conv2c_w"], params["conv2c_bn"], (0, 1))
    x2d = _conv_bn_relu_ref(x1, params["conv2d_w"], params["conv2d_bn"], (1, 0))
    gate_p = (params["gate_fc1_w"], params["gate_fc1_b"],
              params["gate_fc2_w"], params["gate_fc2_b"])
    x2 = (_gate_ref(x2a, gate_p) + _gate_ref(x2b, gate_p)
          + _gate_ref(x2c, gate_p) + _gate_ref(x2d, gate_p))
    x3 = _conv_bn_relu_ref(x2, params["conv3_w"], params["conv3_bn"])
    if "down_w" in params:
        identity = _conv_bn_relu_ref(x_nchw, params["down_w"], params["down_bn"])
    else:
        identity = x_nchw
    return jnp.maximum(x3 + identity, 0.0)


if __name__ == "__main__":
    key = jax.random.PRNGKey(0)
    k_x, k_p = jax.random.split(key)

    N, Cin, H, W = 2, 32, 16, 16
    Cout = 64
    x = jax.random.normal(k_x, (N, Cin, H, W), jnp.float32)
    params = init_osblock_params(k_p, Cin, Cout)

    out = jax.jit(osblock_forward)(x, params)
    out = jax.block_until_ready(out)
    assert out.shape == (N, Cout, H, W), out.shape

    ref = osblock_ref(x, params)
    max_ref = float(jnp.max(jnp.abs(ref)))
    err = float(jnp.max(jnp.abs(out - ref)))
    # bf16 MXU operands + bf16 inter-stage activations (f32 accumulation):
    # tolerance scaled with output magnitude.
    tol = 3e-2 + 1.5e-2 * max_ref
    assert err < tol, f"max abs err {err} (tol {tol}, ref max {max_ref})"
    print("KERNEL_OK")
</pallas_src>

<mosaic_0001>
module attributes {stable_mosaic.version = 11 : i64} {
  func.func @_matmul_bias_relu_kernel(%arg0: i32, %arg1: i32, %arg2: i32, %arg3: memref<256x128xbf16, #tpu.memory_space<vmem>>, %arg4: memref<128x128xbf16, #tpu.memory_space<vmem>>, %arg5: memref<1x128xf32, #tpu.memory_space<vmem>>, %arg6: memref<256x128xbf16, #tpu.memory_space<vmem>>, %arg7: memref<256x128xf32, #tpu.memory_space<vmem>>) attributes {dimension_semantics = [#tpu.dimension_semantics<parallel>, #tpu.dimension_semantics<parallel>, #tpu.dimension_semantics<arbitrary>], iteration_bounds = array<i64: 2, 1, 1>, scalar_prefetch = 0 : i64, scratch_operands = 1 : i64, tpu.core_type = #tpu.core_type<tc>, window_params = [{transform_indices = @transform_0, window_bounds = array<i64: 256, 128>}, {transform_indices = @transform_1, window_bounds = array<i64: 128, 128>}, {transform_indices = @transform_2, window_bounds = array<i64: 1, 128>}, {transform_indices = @transform_3, window_bounds = array<i64: 256, 128>}]} {
    %c0_i32 = arith.constant 0 : i32
    %0 = arith.cmpi eq, %arg2, %c0_i32 : i32
    %1 = arith.extui %0 : i1 to i32
    %c0_i32_0 = arith.constant 0 : i32
    %2 = arith.cmpi ne, %1, %c0_i32_0 : i32
    scf.if %2 {
      %cst_10 = arith.constant 0.000000e+00 : f32
      %12 = vector.broadcast %cst_10 : f32 to vector<256x128xf32>
      %c0_11 = arith.constant 0 : index
      %c0_12 = arith.constant 0 : index
      %13 = vector.load %arg7[%c0_11, %c0_12] : memref<256x128xf32, #tpu.memory_space<vmem>>, vector<256x128xf32>
      tpu.vector_store %arg7[%c0_11, %c0_12], %12 {strides = array<i32>} : memref<256x128xf32, #tpu.memory_space<vmem>>, vector<256x128xf32>,
    } else {
    }
    %c0 = arith.constant 0 : index
    %c0_1 = arith.constant 0 : index
    %3 = vector.load %arg7[%c0, %c0_1] : memref<256x128xf32, #tpu.memory_space<vmem>>, vector<256x128xf32>
    %c0_2 = arith.constant 0 : index
    %c0_3 = arith.constant 0 : index
    %4 = vector.load %arg3[%c0_2, %c0_3] : memref<256x128xbf16, #tpu.memory_space<vmem>>, vector<256x128xbf16>
    %c0_4 = arith.constant 0 : index
    %c0_5 = arith.constant 0 : index
    %5 = vector.load %arg4[%c0_4, %c0_5] : memref<128x128xbf16, #tpu.memory_space<vmem>>, vector<128x128xbf16>
    %cst = arith.constant dense<0.000000e+00> : vector<256x128xf32>
    %6 = tpu.matmul %4, %5, %cst {dimension_numbers = #tpu.dot_dimension_numbers<[1], [0], [0], [1], [0, 0, 1, 1], [], []>} : vector<256x128xbf16>, vector<128x128xbf16>, vector<256x128xf32> -> vector<256x128xf32>
    %7 = arith.addf %3, %6 : vector<256x128xf32>
    %c0_6 = arith.constant 0 : index
    %c0_7 = arith.constant 0 : index
    %8 = vector.load %arg7[%c0_6, %c0_7] : memref<256x128xf32, #tpu.memory_space<vmem>>, vector<256x128xf32>
    tpu.vector_store %arg7[%c0_6, %c0_7], %7 {strides = array<i32>} : memref<256x128xf32, #tpu.memory_space<vmem>>, vector<256x128xf32>,
    %c0_i32_8 = arith.constant 0 : i32
    %9 = arith.cmpi eq, %arg2, %c0_i32_8 : i32
    %10 = arith.extui %9 : i1 to i32
    %c0_i32_9 = arith.constant 0 : i32
    %11 = arith.cmpi ne, %10, %c0_i32_9 : i32
    scf.if %11 {
      %c0_10 = arith.constant 0 : index
      %c0_11 = arith.constant 0 : index
      %12 = vector.load %arg7[%c0_10, %c0_11] : memref<256x128xf32, #tpu.memory_space<vmem>>, vector<256x128xf32>
      %c0_12 = arith.constant 0 : index
      %c0_13 = arith.constant 0 : index
      %13 = vector.load %arg5[%c0_12, %c0_13] : memref<1x128xf32, #tpu.memory_space<vmem>>, vector<1x128xf32>
      %14 = vector.broadcast %13 : vector<1x128xf32> to vector<256x128xf32>
      %15 = arith.addf %12, %14 : vector<256x128xf32>
      %cst_14 = arith.constant 0.000000e+00 : f32
      %16 = vector.broadcast %cst_14 : f32 to vector<256x128xf32>
      %17 = arith.maximumf %15, %16 : vector<256x128xf32>
      %18 = arith.truncf %17 : vector<256x128xf32> to vector<256x128xbf16>
      %c0_15 = arith.constant 0 : index
      %c0_16 = arith.constant 0 : index
      %19 = vector.load %arg6[%c0_15, %c0_16] : memref<256x128xbf16, #tpu.memory_space<vmem>>, vector<256x128xbf16>
      tpu.vector_store %arg6[%c0_15, %c0_16], %18 {strides = array<i32>} : memref<256x128xbf16, #tpu.memory_space<vmem>>, vector<256x128xbf16>,
    } else {
    }
    return
  }
  func.func @transform_0(%arg0: i32, %arg1: i32, %arg2: i32) -> (i32, i32) {
    %c0_i32 = arith.constant 0 : i32
    return %arg0, %arg2 : i32, i32
  }
  func.func @transform_1(%arg0: i32, %arg1: i32, %arg2: i32) -> (i32, i32) {
    %c0_i32 = arith.constant 0 : i32
    return %arg2, %arg1 : i32, i32
  }
  func.func @transform_2(%arg0: i32, %arg1: i32, %arg2: i32) -> (i32, i32) {
    %c0_i32 = arith.constant 0 : i32
    %c0_i32_0 = arith.constant 0 : i32
    return %c0_i32, %arg1 : i32, i32
  }
  func.func @transform_3(%arg0: i32, %arg1: i32, %arg2: i32) -> (i32, i32) {
    %c0_i32 = arith.constant 0 : i32
    return %arg0, %arg1 : i32, i32
  }
}

module attributes {stable_mosaic.version = 11 : i64} {
  func.func @_matmul_bias_relu_kernel(%arg0: i32, %arg1: i32, %arg2: i32, %arg3: memref<256x256xbf16, #tpu.memory_space<vmem>>, %arg4: memref<256x128xbf16, #tpu.memory_space<vmem>>, %arg5: memref<1x128xf32, #tpu.memory_space<vmem>>, %arg6: memref<256x128xbf16, #tpu.memory_space<vmem>>, %arg7: memref<256x128xf32, #tpu.memory_space<vmem>>) attributes {dimension_semantics = [#tpu.dimension_semantics<parallel>, #tpu.dimension_semantics<parallel>, #tpu.dimension_semantics<arbitrary>], iteration_bounds = array<i64: 2, 1, 1>, scalar_prefetch = 0 : i64, scratch_operands = 1 : i64, tpu.core_type = #tpu.core_type<tc>, window_params = [{transform_indices = @transform_0, window_bounds = array<i64: 256, 256>}, {transform_indices = @transform_1, window_bounds = array<i64: 256, 128>}, {transform_indices = @transform_2, window_bounds = array<i64: 1, 128>}, {transform_indices = @transform_3, window_bounds = array<i64: 256, 128>}]} {
    %c0_i32 = arith.constant 0 : i32
    %0 = arith.cmpi eq, %arg2, %c0_i32 : i32
    %1 = arith.extui %0 : i1 to i32
    %c0_i32_0 = arith.constant 0 : i32
    %2 = arith.cmpi ne, %1, %c0_i32_0 : i32
    scf.if %2 {
      %cst_10 = arith.constant 0.000000e+00 : f32
      %12 = vector.broadcast %cst_10 : f32 to vector<256x128xf32>
      %c0_11 = arith.constant 0 : index
      %c0_12 = arith.constant 0 : index
      %13 = vector.load %arg7[%c0_11, %c0_12] : memref<256x128xf32, #tpu.memory_space<vmem>>, vector<256x128xf32>
      tpu.vector_store %arg7[%c0_11, %c0_12], %12 {strides = array<i32>} : memref<256x128xf32, #tpu.memory_space<vmem>>, vector<256x128xf32>,
    } else {
    }
    %c0 = arith.constant 0 : index
    %c0_1 = arith.constant 0 : index
    %3 = vector.load %arg7[%c0, %c0_1] : memref<256x128xf32, #tpu.memory_space<vmem>>, vector<256x128xf32>
    %c0_2 = arith.constant 0 : index
    %c0_3 = arith.constant 0 : index
    %4 = vector.load %arg3[%c0_2, %c0_3] : memref<256x256xbf16, #tpu.memory_space<vmem>>, vector<256x256xbf16>
    %c0_4 = arith.constant 0 : index
    %c0_5 = arith.constant 0 : index
    %5 = vector.load %arg4[%c0_4, %c0_5] : memref<256x128xbf16, #tpu.memory_space<vmem>>, vector<256x128xbf16>
    %cst = arith.constant dense<0.000000e+00> : vector<256x128xf32>
    %6 = tpu.matmul %4, %5, %cst {dimension_numbers = #tpu.dot_dimension_numbers<[1], [0], [0], [1], [0, 0, 1, 1], [], []>} : vector<256x256xbf16>, vector<256x128xbf16>, vector<256x128xf32> -> vector<256x128xf32>
    %7 = arith.addf %3, %6 : vector<256x128xf32>
    %c0_6 = arith.constant 0 : index
    %c0_7 = arith.constant 0 : index
    %8 = vector.load %arg7[%c0_6, %c0_7] : memref<256x128xf32, #tpu.memory_space<vmem>>, vector<256x128xf32>
    tpu.vector_store %arg7[%c0_6, %c0_7], %7 {strides = array<i32>} : memref<256x128xf32, #tpu.memory_space<vmem>>, vector<256x128xf32>,
    %c0_i32_8 = arith.constant 0 : i32
    %9 = arith.cmpi eq, %arg2, %c0_i32_8 : i32
    %10 = arith.extui %9 : i1 to i32
    %c0_i32_9 = arith.constant 0 : i32
    %11 = arith.cmpi ne, %10, %c0_i32_9 : i32
    scf.if %11 {
      %c0_10 = arith.constant 0 : index
      %c0_11 = arith.constant 0 : index
      %12 = vector.load %arg7[%c0_10, %c0_11] : memref<256x128xf32, #tpu.memory_space<vmem>>, vector<256x128xf32>
      %c0_12 = arith.constant 0 : index
      %c0_13 = arith.constant 0 : index
      %13 = vector.load %arg5[%c0_12, %c0_13] : memref<1x128xf32, #tpu.memory_space<vmem>>, vector<1x128xf32>
      %14 = vector.broadcast %13 : vector<1x128xf32> to vector<256x128xf32>
      %15 = arith.addf %12, %14 : vector<256x128xf32>
      %cst_14 = arith.constant 0.000000e+00 : f32
      %16 = vector.broadcast %cst_14 : f32 to vector<256x128xf32>
      %17 = arith.maximumf %15, %16 : vector<256x128xf32>
      %18 = arith.truncf %17 : vector<256x128xf32> to vector<256x128xbf16>
      %c0_15 = arith.constant 0 : index
      %c0_16 = arith.constant 0 : index
      %19 = vector.load %arg6[%c0_15, %c0_16] : memref<256x128xbf16, #tpu.memory_space<vmem>>, vector<256x128xbf16>
      tpu.vector_store %arg6[%c0_15, %c0_16], %18 {strides = array<i32>} : memref<256x128xbf16, #tpu.memory_space<vmem>>, vector<256x128xbf16>,
    } else {
    }
    return
  }
  func.func @transform_0(%arg0: i32, %arg1: i32, %arg2: i32) -> (i32, i32) {
    %c0_i32 = arith.constant 0 : i32
    return %arg0, %arg2 : i32, i32
  }
  func.func @transform_1(%arg0: i32, %arg1: i32, %arg2: i32) -> (i32, i32) {
    %c0_i32 = arith.constant 0 : i32
    return %arg2, %arg1 : i32, i32
  }
  func.func @transform_2(%arg0: i32, %arg1: i32, %arg2: i32) -> (i32, i32) {
    %c0_i32 = arith.constant 0 : i32
    %c0_i32_0 = arith.constant 0 : i32
    return %c0_i32, %arg1 : i32, i32
  }
  func.func @transform_3(%arg0: i32, %arg1: i32, %arg2: i32) -> (i32, i32) {
    %c0_i32 = arith.constant 0 : i32
    return %arg0, %arg1 : i32, i32
  }
}

module attributes {stable_mosaic.version = 11 : i64} {
  func.func @_gate_mlp_kernel(%arg0: memref<8x128xf32, #tpu.memory_space<vmem>>, %arg1: memref<128x128xf32, #tpu.memory_space<vmem>>, %arg2: memref<1x128xf32, #tpu.memory_space<vmem>>, %arg3: memref<128x128xf32, #tpu.memory_space<vmem>>, %arg4: memref<1x128xf32, #tpu.memory_space<vmem>>, %arg5: memref<8x128xf32, #tpu.memory_space<vmem>>) attributes {dimension_semantics = [], scalar_prefetch = 0 : i64, scratch_operands = 0 : i64, tpu.core_type = #tpu.core_type<tc>} {
    %c0 = arith.constant 0 : index
    %c0_0 = arith.constant 0 : index
    %0 = vector.load %arg0[%c0, %c0_0] : memref<8x128xf32, #tpu.memory_space<vmem>>, vector<8x128xf32>
    %c0_1 = arith.constant 0 : index
    %c0_2 = arith.constant 0 : index
    %1 = vector.load %arg1[%c0_1, %c0_2] : memref<128x128xf32, #tpu.memory_space<vmem>>, vector<128x128xf32>
    %cst = arith.constant dense<0.000000e+00> : vector<8x128xf32>
    %2 = tpu.matmul %0, %1, %cst {dimension_numbers = #tpu.dot_dimension_numbers<[1], [0], [0], [1], [0, 0, 1, 1], [], []>} : vector<8x128xf32>, vector<128x128xf32>, vector<8x128xf32> -> vector<8x128xf32>
    %c0_3 = arith.constant 0 : index
    %c0_4 = arith.constant 0 : index
    %3 = vector.load %arg2[%c0_3, %c0_4] : memref<1x128xf32, #tpu.memory_space<vmem>>, vector<1x128xf32>
    %4 = vector.broadcast %3 : vector<1x128xf32> to vector<8x128xf32>
    %5 = arith.addf %2, %4 : vector<8x128xf32>
    %cst_5 = arith.constant 0.000000e+00 : f32
    %6 = vector.broadcast %cst_5 : f32 to vector<8x128xf32>
    %7 = arith.maximumf %5, %6 : vector<8x128xf32>
    %c0_6 = arith.constant 0 : index
    %c0_7 = arith.constant 0 : index
    %8 = vector.load %arg3[%c0_6, %c0_7] : memref<128x128xf32, #tpu.memory_space<vmem>>, vector<128x128xf32>
    %cst_8 = arith.constant dense<0.000000e+00> : vector<8x128xf32>
    %9 = tpu.matmul %7, %8, %cst_8 {dimension_numbers = #tpu.dot_dimension_numbers<[1], [0], [0], [1], [0, 0, 1, 1], [], []>} : vector<8x128xf32>, vector<128x128xf32>, vector<8x128xf32> -> vector<8x128xf32>
    %c0_9 = arith.constant 0 : index
    %c0_10 = arith.constant 0 : index
    %10 = vector.load %arg4[%c0_9, %c0_10] : memref<1x128xf32, #tpu.memory_space<vmem>>, vector<1x128xf32>
    %11 = vector.broadcast %10 : vector<1x128xf32> to vector<8x128xf32>
    %12 = arith.addf %9, %11 : vector<8x128xf32>
    %13 = arith.negf %12 : vector<8x128xf32>
    %14 = math.exp %13 : vector<8x128xf32>
    %cst_11 = arith.constant 1.000000e+00 : f32
    %15 = vector.broadcast %cst_11 : f32 to vector<8x128xf32>
    %16 = arith.addf %15, %14 : vector<8x128xf32>
    %17 = arith.divf %15, %16 : vector<8x128xf32>
    %c0_12 = arith.constant 0 : index
    %c0_13 = arith.constant 0 : index
    %18 = vector.load %arg5[%c0_12, %c0_13] : memref<8x128xf32, #tpu.memory_space<vmem>>, vector<8x128xf32>
    tpu.vector_store %arg5[%c0_12, %c0_13], %17 {strides = array<i32>} : memref<8x128xf32, #tpu.memory_space<vmem>>, vector<8x128xf32>,
    return
  }
}

module attributes {stable_mosaic.version = 11 : i64} {
  func.func @_gated_matmul_residual_kernel(%arg0: i32, %arg1: i32, %arg2: i32, %arg3: i32, %arg4: memref<1x256x128xbf16, #tpu.memory_space<vmem>>, %arg5: memref<1x1x128xf32, #tpu.memory_space<vmem>>, %arg6: memref<128x128xbf16, #tpu.memory_space<vmem>>, %arg7: memref<1x128xf32, #tpu.memory_space<vmem>>, %arg8: memref<1x256x128xbf16, #tpu.memory_space<vmem>>, %arg9: memref<1x256x128xf32, #tpu.memory_space<vmem>>, %arg10: memref<256x128xf32, #tpu.memory_space<vmem>>) attributes {dimension_semantics = [#tpu.dimension_semantics<parallel>, #tpu.dimension_semantics<parallel>, #tpu.dimension_semantics<parallel>, #tpu.dimension_semantics<arbitrary>], iteration_bounds = array<i64: 2, 1, 1, 1>, scalar_prefetch = 0 : i64, scratch_operands = 1 : i64, tpu.core_type = #tpu.core_type<tc>, window_params = [{transform_indices = @transform_0, window_bounds = array<i64: 1, 256, 128>}, {transform_indices = @transform_1, window_bounds = array<i64: 1, 1, 128>}, {transform_indices = @transform_2, window_bounds = array<i64: 128, 128>}, {transform_indices = @transform_3, window_bounds = array<i64: 1, 128>}, {transform_indices = @transform_4, window_bounds = array<i64: 1, 256, 128>}, {transform_indices = @transform_5, window_bounds = array<i64: 1, 256, 128>}]} {
    %c0_i32 = arith.constant 0 : i32
    %0 = arith.cmpi eq, %arg3, %c0_i32 : i32
    %1 = arith.extui %0 : i1 to i32
    %c0_i32_0 = arith.constant 0 : i32
    %2 = arith.cmpi ne, %1, %c0_i32_0 : i32
    scf.if %2 {
      %cst_14 = arith.constant 0.000000e+00 : f32
      %19 = vector.broadcast %cst_14 : f32 to vector<256x128xf32>
      %c0_15 = arith.constant 0 : index
      %c0_16 = arith.constant 0 : index
      %20 = vector.load %arg10[%c0_15, %c0_16] : memref<256x128xf32, #tpu.memory_space<vmem>>, vector<256x128xf32>
      tpu.vector_store %arg10[%c0_15, %c0_16], %19 {strides = array<i32>} : memref<256x128xf32, #tpu.memory_space<vmem>>, vector<256x128xf32>,
    } else {
    }
    %c0 = arith.constant 0 : index
    %c0_1 = arith.constant 0 : index
    %c0_2 = arith.constant 0 : index
    %3 = vector.load %arg4[%c0, %c0_1, %c0_2] : memref<1x256x128xbf16, #tpu.memory_space<vmem>>, vector<1x256x128xbf16>
    %4 = vector.shape_cast %3 : vector<1x256x128xbf16> to vector<256x128xbf16>
    %5 = arith.extf %4 : vector<256x128xbf16> to vector<256x128xf32>
    %c0_3 = arith.constant 0 : index
    %c0_4 = arith.constant 0 : index
    %c0_5 = arith.constant 0 : index
    %6 = vector.load %arg5[%c0_3, %c0_4, %c0_5] : memref<1x1x128xf32, #tpu.memory_space<vmem>>, vector<1x1x128xf32>
    %7 = vector.shape_cast %6 : vector<1x1x128xf32> to vector<1x128xf32>
    %8 = vector.broadcast %7 : vector<1x128xf32> to vector<256x128xf32>
    %9 = arith.mulf %5, %8 : vector<256x128xf32>
    %c0_6 = arith.constant 0 : index
    %c0_7 = arith.constant 0 : index
    %10 = vector.load %arg10[%c0_6, %c0_7] : memref<256x128xf32, #tpu.memory_space<vmem>>, vector<256x128xf32>
    %11 = arith.truncf %9 : vector<256x128xf32> to vector<256x128xbf16>
    %c0_8 = arith.constant 0 : index
    %c0_9 = arith.constant 0 : index
    %12 = vector.load %arg6[%c0_8, %c0_9] : memref<128x128xbf16, #tpu.memory_space<vmem>>, vector<128x128xbf16>
    %cst = arith.constant dense<0.000000e+00> : vector<256x128xf32>
    %13 = tpu.matmul %11, %12, %cst {dimension_numbers = #tpu.dot_dimension_numbers<[1], [0], [0], [1], [0, 0, 1, 1], [], []>} : vector<256x128xbf16>, vector<128x128xbf16>, vector<256x128xf32> -> vector<256x128xf32>
    %14 = arith.addf %10, %13 : vector<256x128xf32>
    %c0_10 = arith.constant 0 : index
    %c0_11 = arith.constant 0 : index
    %15 = vector.load %arg10[%c0_10, %c0_11] : memref<256x128xf32, #tpu.memory_space<vmem>>, vector<256x128xf32>
    tpu.vector_store %arg10[%c0_10, %c0_11], %14 {strides = array<i32>} : memref<256x128xf32, #tpu.memory_space<vmem>>, vector<256x128xf32>,
    %c0_i32_12 = arith.constant 0 : i32
    %16 = arith.cmpi eq, %arg3, %c0_i32_12 : i32
    %17 = arith.extui %16 : i1 to i32
    %c0_i32_13 = arith.constant 0 : i32
    %18 = arith.cmpi ne, %17, %c0_i32_13 : i32
    scf.if %18 {
      %c0_14 = arith.constant 0 : index
      %c0_15 = arith.constant 0 : index
      %19 = vector.load %arg10[%c0_14, %c0_15] : memref<256x128xf32, #tpu.memory_space<vmem>>, vector<256x128xf32>
      %c0_16 = arith.constant 0 : index
      %c0_17 = arith.constant 0 : index
      %20 = vector.load %arg7[%c0_16, %c0_17] : memref<1x128xf32, #tpu.memory_space<vmem>>, vector<1x128xf32>
      %21 = vector.broadcast %20 : vector<1x128xf32> to vector<256x128xf32>
      %22 = arith.addf %19, %21 : vector<256x128xf32>
      %cst_18 = arith.constant 0.000000e+00 : f32
      %23 = vector.broadcast %cst_18 : f32 to vector<256x128xf32>
      %24 = arith.maximumf %22, %23 : vector<256x128xf32>
      %c0_19 = arith.constant 0 : index
      %c0_20 = arith.constant 0 : index
      %c0_21 = arith.constant 0 : index
      %25 = vector.load %arg8[%c0_19, %c0_20, %c0_21] : memref<1x256x128xbf16, #tpu.memory_space<vmem>>, vector<1x256x128xbf16>
      %26 = vector.shape_cast %25 : vector<1x256x128xbf16> to vector<256x128xbf16>
      %27 = arith.extf %26 : vector<256x128xbf16> to vector<256x128xf32>
      %28 = arith.addf %24, %27 : vector<256x128xf32>
      %cst_22 = arith.constant 0.000000e+00 : f32
      %29 = vector.broadcast %cst_22 : f32 to vector<256x128xf32>
      %30 = arith.maximumf %28, %29 : vector<256x128xf32>
      %c0_23 = arith.constant 0 : index
      %c0_24 = arith.constant 0 : index
      %c0_25 = arith.constant 0 : index
      %31 = vector.load %arg9[%c0_23, %c0_24, %c0_25] : memref<1x256x128xf32, #tpu.memory_space<vmem>>, vector<1x256x128xf32>
      %32 = vector.shape_cast %31 : vector<1x256x128xf32> to vector<256x128xf32>
      %33 = vector.shape_cast %30 : vector<256x128xf32> to vector<1x256x128xf32>
      tpu.vector_store %arg9[%c0_23, %c0_24, %c0_25], %33 {strides = array<i32>} : memref<1x256x128xf32, #tpu.memory_space<vmem>>, vector<1x256x128xf32>,
    } else {
    }
    return
  }
  func.func @transform_0(%arg0: i32, %arg1: i32, %arg2: i32, %arg3: i32) -> (i32, i32, i32) {
    %c0_i32 = arith.constant 0 : i32
    return %arg0, %arg1, %arg3 : i32, i32, i32
  }
  func.func @transform_1(%arg0: i32, %arg1: i32, %arg2: i32, %arg3: i32) -> (i32, i32, i32) {
    %c0_i32 = arith.constant 0 : i32
    %c0_i32_0 = arith.constant 0 : i32
    return %arg0, %c0_i32, %arg3 : i32, i32, i32
  }
  func.func @transform_2(%arg0: i32, %arg1: i32, %arg2: i32, %arg3: i32) -> (i32, i32) {
    %c0_i32 = arith.constant 0 : i32
    return %arg3, %arg2 : i32, i32
  }
  func.func @transform_3(%arg0: i32, %arg1: i32, %arg2: i32, %arg3: i32) -> (i32, i32) {
    %c0_i32 = arith.constant 0 : i32
    %c0_i32_0 = arith.constant 0 : i32
    return %c0_i32, %arg2 : i32, i32
  }
  func.func @transform_4(%arg0: i32, %arg1: i32, %arg2: i32, %arg3: i32) -> (i32, i32, i32) {
    %c0_i32 = arith.constant 0 : i32
    return %arg0, %arg1, %arg2 : i32, i32, i32
  }
  func.func @transform_5(%arg0: i32, %arg1: i32, %arg2: i32, %arg3: i32) -> (i32, i32, i32) {
    %c0_i32 = arith.constant 0 : i32
    return %arg0, %arg1, %arg2 : i32, i32, i32
  }
}

</mosaic_0001>

<bundles_post_ra>
// kernel: osblock_forward.5
= control target key start
LH: loop header
LB: loop body
LE: loop exit
PB: predicated region body
PF: predicated region fallthrough
CT: control target
= control target key end

     0   :  { %s1271_s12 = smov 0   ;;  %s1273_s13 = smov 0   ;;  %s1411_s0 = inlined_call_operand.vmem [shape: bf16[512,128], index: 0, kind: input, shape index: {}]   ;;  %s1412_s1 = inlined_call_operand.vmem [shape: bf16[128,128], index: 1, kind: input, shape index: {}]   ;;  %s1413_s2 = inlined_call_operand.vmem [shape: f32[1,128], index: 2, kind: input, shape index: {}]   ;;  %s1414_s3 = inlined_call_operand.vmem [shape: bf16[512,128], index: 3, kind: output, shape index: {}]  }
   0x1   :  { %s1275_s14 = smov 0  }
   0x2 LB: > { %s32_s15 = sadd.s32 1, %s1245_s13  ;;  %p956_p0 = scmp.ge.s32.totalorder %s1249_s14, 1  ;;  %s1249_s14 = sphi %s1275_s14, %s13_s14   ;;  %s1245_s13 = sphi %s1273_s13, %s1416_s13   ;;  %s1241_s12 = sphi %s1271_s12, %s1415_s12  }
   0x3   : > { %p34_p1 = scmp.ge.s32.totalorder %s32_s15, 2  ;;  %p188_p2 = scmp.lt.s32.totalorder %s1249_s14, 3 }
   0x5   : > { %s1418_s15 = smov (%p34_p1, %s32_s15), 0  ;;  %p189_p3 = pnand %p956_p0, %p188_p2 }
   0x6   : > { %s957_s24 = sshll.u32 (!%p189_p3), %s1241_s12, 5 }
   0x7   : > { %192 = sbr.rel (%p189_p3) target bundleno = 241 (0xf1), region = 32  ;;  %p230_p4 = scmp.lt.s32.totalorder (!%p189_p3), %s957_s24, 63 }
   0xc   : > { %v1082_v0 = vld [vmem:[%s1412_s1 + $0x38] sm:$0xff]  ;;  %v1081_v1 = vld [vmem:[%s1412_s1 + $0x30] sm:$0xff]  ;;  %v1080_v2 = vld [vmem:[%s1412_s1 + $0x28] sm:$0xff]  ;;  %s1420_s24 = smov (!%p230_p4, %s957_s24), 63 }
   0xd   : > { %519 = vmatpush.bf16.msra.mxu0 %v1082_v0  ;;  %1178 = vmatpush.bf16.msra.mxu1 %v1082_v0  ;;  %v1079_v3 = vld [vmem:[%s1412_s1 + $0x20] sm:$0xff]  ;;  %v1078_v4 = vld [vmem:[%s1412_s1 + $0x18] sm:$0xff]  ;;  %v1077_v5 = vld [vmem:[%s1412_s1 + $0x10] sm:$0xff]  ;;  %s958_s4 = sshll.u32 %s1420_s24, 2 }
   0xe   : > { %1179 = vmatpush.bf16.msra.mxu2 %v1082_v0  ;;  %1180 = vmatpush.bf16.msra.mxu3 %v1082_v0  ;;  %v1076_v6 = vld [vmem:[%s1412_s1 + $0x8] sm:$0xff]  ;;  %v1075_v7 = vld [vmem:[%s1412_s1] sm:$0xff]  ;;  %s1324_s9 = scalar_lea.vmem %s1411_s0, %s958_s4  ;;  %s1356_s17 = scalar_lea.vmem %s1414_s3, %s958_s4 }
   0xf   : > { %v1059_v8 = vld [vmem:[%s1324_s9] sm:$0xff]  ;;  %v1060_v12 = vld [vmem:[%s1324_s9 + $0x8] sm:$0xff]  ;;  %v1061_v16 = vld [vmem:[%s1324_s9 + $0x10] sm:$0xff] }
  0x10   : > { %v1063_v9 = vld [vmem:[%s1324_s9 + $0x20] sm:$0xff]  ;;  %v1064_v13 = vld [vmem:[%s1324_s9 + $0x28] sm:$0xff]  ;;  %v1065_v17 = vld [vmem:[%s1324_s9 + $0x30] sm:$0xff] }
  0x11   : > { %520 = vmatpush.bf16.msra.mxu0 %v1081_v1  ;;  %1181 = vmatpush.bf16.msra.mxu1 %v1081_v1  ;;  %v1067_v10 = vld [vmem:[%s1324_s9 + $0x40] sm:$0xff]  ;;  %v1068_v14 = vld [vmem:[%s1324_s9 + $0x48] sm:$0xff]  ;;  %v1069_v18 = vld [vmem:[%s1324_s9 + $0x50] sm:$0xff] }
  0x12   : > { %1182 = vmatpush.bf16.msra.mxu2 %v1081_v1  ;;  %1183 = vmatpush.bf16.msra.mxu3 %v1081_v1  ;;  %v1071_v11 = vld [vmem:[%s1324_s9 + $0x60] sm:$0xff]  ;;  %v1072_v15 = vld [vmem:[%s1324_s9 + $0x68] sm:$0xff]  ;;  %v1073_v19 = vld [vmem:[%s1324_s9 + $0x70] sm:$0xff] }
  0x13   : > { %v1062_v20 = vld [vmem:[%s1324_s9 + $0x18] sm:$0xff]  ;;  %v1345_v26 = vld [vmem:[%s1413_s2] ss:$0 sm:$0xff] }
  0x14   : > { %v1066_v21 = vld [vmem:[%s1324_s9 + $0x38] sm:$0xff] }
  0x15   : > { %521 = vmatpush.bf16.msra.mxu0 %v1080_v2  ;;  %1184 = vmatpush.bf16.msra.mxu1 %v1080_v2  ;;  %v1070_v22 = vld [vmem:[%s1324_s9 + $0x58] sm:$0xff] }
  0x16   : > { %1185 = vmatpush.bf16.msra.mxu2 %v1080_v2  ;;  %1186 = vmatpush.bf16.msra.mxu3 %v1080_v2  ;;  %v1074_v23 = vld [vmem:[%s1324_s9 + $0x78] sm:$0xff] }
  0x19   : > { %522 = vmatpush.bf16.msra.mxu0 %v1079_v3  ;;  %1187 = vmatpush.bf16.msra.mxu1 %v1079_v3 }
  0x1a   : > { %1188 = vmatpush.bf16.msra.mxu2 %v1079_v3  ;;  %1189 = vmatpush.bf16.msra.mxu3 %v1079_v3 }
  0x1d   : > { %523 = vmatpush.bf16.msra.mxu0 %v1078_v4  ;;  %1190 = vmatpush.bf16.msra.mxu1 %v1078_v4 }
  0x1e   : > { %1191 = vmatpush.bf16.msra.mxu2 %v1078_v4  ;;  %1192 = vmatpush.bf16.msra.mxu3 %v1078_v4 }
  0x21   : > { %524 = vmatpush.bf16.msra.mxu0 %v1077_v5  ;;  %1193 = vmatpush.bf16.msra.mxu1 %v1077_v5 }
  0x22   : > { %1194 = vmatpush.bf16.msra.mxu2 %v1077_v5  ;;  %1195 = vmatpush.bf16.msra.mxu3 %v1077_v5 }
  0x25   : > { %525 = vmatpush.bf16.msra.mxu0 %v1076_v6  ;;  %1196 = vmatpush.bf16.msra.mxu1 %v1076_v6 }
  0x26   : > { %1197 = vmatpush.bf16.msra.mxu2 %v1076_v6  ;;  %1198 = vmatpush.bf16.msra.mxu3 %v1076_v6 }
  0x29   : > { %526 = vmatpush.bf16.msra.mxu0 %v1075_v7  ;;  %1199 = vmatpush.bf16.msra.mxu1 %v1075_v7 }
  0x2a   : > { %1200 = vmatpush.bf16.msra.mxu2 %v1075_v7  ;;  %1201 = vmatpush.bf16.msra.mxu3 %v1075_v7 }
  0x2c   : > { %527 = vmatmul.bf16.vlgmr.msra.gmra.mxu0 %v1059_v8  ;;  %547 = vmatmul.bf16.vlgmr.msra.gmra.mxu1 %v1063_v9 }
  0x2d   : > { %567 = vmatmul.bf16.vlgmr.msra.gmra.mxu2 %v1067_v10  ;;  %587 = vmatmul.bf16.vlgmr.msra.gmra.mxu3 %v1071_v11 }
  0x3c   : > { %532 = vmatmul.bf16.gmra.mxu0 %v1060_v12  ;;  %552 = vmatmul.bf16.gmra.mxu1 %v1064_v13 }
  0x3d   : > { %572 = vmatmul.bf16.gmra.mxu2 %v1068_v14  ;;  %592 = vmatmul.bf16.gmra.mxu3 %v1072_v15 }
  0x4c   : > { %537 = vmatmul.bf16.gmra.mxu0 %v1061_v16  ;;  %557 = vmatmul.bf16.gmra.mxu1 %v1065_v17 }
  0x4d   : > { %577 = vmatmul.bf16.gmra.mxu2 %v1069_v18  ;;  %597 = vmatmul.bf16.gmra.mxu3 %v1073_v19 }
  0x5c   : > { %542 = vmatmul.bf16.gmra.mxu0 %v1062_v20  ;;  %562 = vmatmul.bf16.gmra.mxu1 %v1066_v21 }
  0x5d   : > { %582 = vmatmul.bf16.gmra.mxu2 %v1070_v22  ;;  %602 = vmatmul.bf16.gmra.mxu3 %v1074_v23 }
  0xa9   : > { %v528_v24 = vpop.f32.mrf.mxu0  ;;  %v548_v25 = vpop.f32.mrf.mxu1 }
  0xaa   : > { %v711_v27 = vadd.f32 %v1345_v26, %v528_v24  ;;  %v719_v28 = vadd.f32 %v1345_v26, %v548_v25 }
  0xac   : > { %v743_v35 = vmax.f32 %v711_v27, 0.0  ;;  %v751_v36 = vmax.f32 %v719_v28, 0.0 }
  0xb0   : > { %v568_v29 = vpop.f32.mrf.mxu2  ;;  %v588_v30 = vpop.f32.mrf.mxu3 }
  0xb1   : > { %v530_v31 = vpop.f32.mrf.mxu0  ;;  %v550_v32 = vpop.f32.mrf.mxu1  ;;  %v727_v41 = vadd.f32 %v1345_v26, %v568_v29  ;;  %v735_v42 = vadd.f32 %v1345_v26, %v588_v30 }
  0xb2   : > { %v712_v33 = vadd.f32 %v1345_v26, %v530_v31  ;;  %v720_v34 = vadd.f32 %v1345_v26, %v550_v32 }
  0xb3   : > { %v759_v49 = vmax.f32 %v727_v41, 0.0  ;;  %v767_v50 = vmax.f32 %v735_v42, 0.0 }
  0xb4   : > { %v744_v37 = vmax.f32 %v712_v33, 0.0  ;;  %v752_v38 = vmax.f32 %v720_v34, 0.0 }
  0xb6   : > { %v1086_v39 = vpack.c.bf16 %v744_v37, %v743_v35  ;;  %v1106_v40 = vpack.c.bf16 %v752_v38, %v751_v36 }
  0xb8   : > { %1087 = vst [vmem:[%s1356_s17] sm:$0xff] %v1086_v39   ;;  %v570_v43 = vpop.f32.mrf.mxu2  ;;  %v590_v44 = vpop.f32.mrf.mxu3 }
  0xb9   : > { %1166 = vst [vmem:[%s1356_s17 + $0x20] sm:$0xff] %v1106_v40   ;;  %v728_v45 = vadd.f32 %v1345_v26, %v570_v43  ;;  %v736_v46 = vadd.f32 %v1345_v26, %v590_v44  ;;  %v533_v47 = vpop.f32.mrf.mxu0  ;;  %v553_v48 = vpop.f32.mrf.mxu1 }
  0xba   : > { %v713_v55 = vadd.f32 %v1345_v26, %v533_v47  ;;  %v721_v56 = vadd.f32 %v1345_v26, %v553_v48 }
  0xbb   : > { %v760_v51 = vmax.f32 %v728_v45, 0.0  ;;  %v768_v52 = vmax.f32 %v736_v46, 0.0 }
  0xbc   : > { %v745_v63 = vmax.f32 %v713_v55, 0.0  ;;  %v753_v0 = vmax.f32 %v721_v56, 0.0 }
  0xbd   : > { %v1126_v53 = vpack.c.bf16 %v760_v51, %v759_v49  ;;  %v1146_v54 = vpack.c.bf16 %v768_v52, %v767_v50 }
  0xbf   : > { %1170 = vst [vmem:[%s1356_s17 + $0x40] sm:$0xff] %v1126_v53  }
  0xc0   : > { %1174 = vst [vmem:[%s1356_s17 + $0x60] sm:$0xff] %v1146_v54   ;;  %v573_v57 = vpop.f32.mrf.mxu2  ;;  %v593_v58 = vpop.f32.mrf.mxu3 }
  0xc1   : > { %v535_v59 = vpop.f32.mrf.mxu0  ;;  %v555_v60 = vpop.f32.mrf.mxu1  ;;  %v729_v5 = vadd.f32 %v1345_v26, %v573_v57  ;;  %v737_v6 = vadd.f32 %v1345_v26, %v593_v58 }
  0xc2   : > { %v714_v61 = vadd.f32 %v1345_v26, %v535_v59  ;;  %v722_v62 = vadd.f32 %v1345_v26, %v555_v60 }
  0xc3   : > { %v761_v13 = vmax.f32 %v729_v5, 0.0  ;;  %v769_v14 = vmax.f32 %v737_v6, 0.0 }
  0xc4   : > { %v746_v1 = vmax.f32 %v714_v61, 0.0  ;;  %v754_v2 = vmax.f32 %v722_v62, 0.0 }
  0xc6   : > { %v1091_v3 = vpack.c.bf16 %v746_v1, %v745_v63  ;;  %v1111_v4 = vpack.c.bf16 %v754_v2, %v753_v0 }
  0xc8   : > { %1163 = vst [vmem:[%s1356_s17 + $0x8] sm:$0xff] %v1091_v3   ;;  %v575_v7 = vpop.f32.mrf.mxu2  ;;  %v595_v8 = vpop.f32.mrf.mxu3 }
  0xc9   : > { %1167 = vst [vmem:[%s1356_s17 + $0x28] sm:$0xff] %v1111_v4   ;;  %v730_v9 = vadd.f32 %v1345_v26, %v575_v7  ;;  %v738_v10 = vadd.f32 %v1345_v26, %v595_v8  ;;  %v538_v11 = vpop.f32.mrf.mxu0  ;;  %v558_v12 = vpop.f32.mrf.mxu1 }
  0xca   : > { %v715_v19 = vadd.f32 %v1345_v26, %v538_v11  ;;  %v723_v20 = vadd.f32 %v1345_v26, %v558_v12 }
  0xcb   : > { %v762_v15 = vmax.f32 %v730_v9, 0.0  ;;  %v770_v16 = vmax.f32 %v738_v10, 0.0 }
  0xcc   : > { %v747_v28 = vmax.f32 %v715_v19, 0.0  ;;  %v755_v29 = vmax.f32 %v723_v20, 0.0 }
  0xcd   : > { %v1131_v17 = vpack.c.bf16 %v762_v15, %v761_v13  ;;  %v1151_v18 = vpack.c.bf16 %v770_v16, %v769_v14 }
  0xcf   : > { %1171 = vst [vmem:[%s1356_s17 + $0x48] sm:$0xff] %v1131_v17  }
  0xd0   : > { %1175 = vst [vmem:[%s1356_s17 + $0x68] sm:$0xff] %v1151_v18   ;;  %v578_v21 = vpop.f32.mrf.mxu2  ;;  %v598_v22 = vpop.f32.mrf.mxu3 }
  0xd1   : > { %v540_v23 = vpop.f32.mrf.mxu0  ;;  %v560_v24 = vpop.f32.mrf.mxu1  ;;  %v731_v34 = vadd.f32 %v1345_v26, %v578_v21  ;;  %v739_v35 = vadd.f32 %v1345_v26, %v598_v22 }
  0xd2   : > { %v716_v25 = vadd.f32 %v1345_v26, %v540_v23  ;;  %v724_v27 = vadd.f32 %v1345_v26, %v560_v24 }
  0xd3   : > { %v763_v42 = vmax.f32 %v731_v34, 0.0  ;;  %v771_v43 = vmax.f32 %v739_v35, 0.0 }
  0xd4   : > { %v748_v30 = vmax.f32 %v716_v25, 0.0  ;;  %v756_v31 = vmax.f32 %v724_v27, 0.0 }
  0xd6   : > { %v1096_v32 = vpack.c.bf16 %v748_v30, %v747_v28  ;;  %v1116_v33 = vpack.c.bf16 %v756_v31, %v755_v29 }
  0xd8   : > { %1164 = vst [vmem:[%s1356_s17 + $0x10] sm:$0xff] %v1096_v32   ;;  %v580_v36 = vpop.f32.mrf.mxu2  ;;  %v600_v37 = vpop.f32.mrf.mxu3 }
  0xd9   : > { %1168 = vst [vmem:[%s1356_s17 + $0x30] sm:$0xff] %v1116_v33   ;;  %v732_v38 = vadd.f32 %v1345_v26, %v580_v36  ;;  %v740_v39 = vadd.f32 %v1345_v26, %v600_v37  ;;  %v543_v40 = vpop.f32.mrf.mxu0  ;;  %v563_v41 = vpop.f32.mrf.mxu1 }
  0xda   : > { %v717_v48 = vadd.f32 %v1345_v26, %v543_v40  ;;  %v725_v49 = vadd.f32 %v1345_v26, %v563_v41 }
  0xdb   : > { %v764_v44 = vmax.f32 %v732_v38, 0.0  ;;  %v772_v45 = vmax.f32 %v740_v39, 0.0 }
  0xdc   : > { %v749_v56 = vmax.f32 %v717_v48, 0.0  ;;  %v757_v57 = vmax.f32 %v725_v49, 0.0 }
  0xdd   : > { %v1136_v46 = vpack.c.bf16 %v764_v44, %v763_v42  ;;  %v1156_v47 = vpack.c.bf16 %v772_v45, %v771_v43 }
  0xdf   : > { %1172 = vst [vmem:[%s1356_s17 + $0x50] sm:$0xff] %v1136_v46  }
  0xe0   : > { %1176 = vst [vmem:[%s1356_s17 + $0x70] sm:$0xff] %v1156_v47   ;;  %v583_v50 = vpop.f32.mrf.mxu2  ;;  %v603_v51 = vpop.f32.mrf.mxu3 }
  0xe1   : > { %v545_v52 = vpop.f32.mrf.mxu0  ;;  %v565_v53 = vpop.f32.mrf.mxu1  ;;  %v733_v62 = vadd.f32 %v1345_v26, %v583_v50  ;;  %v741_v63 = vadd.f32 %v1345_v26, %v603_v51 }
  0xe2   : > { %v718_v54 = vadd.f32 %v1345_v26, %v545_v52  ;;  %v726_v55 = vadd.f32 %v1345_v26, %v565_v53 }
  0xe3   : > { %v765_v4 = vmax.f32 %v733_v62, 0.0  ;;  %v773_v5 = vmax.f32 %v741_v63, 0.0 }
  0xe4   : > { %v750_v58 = vmax.f32 %v718_v54, 0.0  ;;  %v758_v59 = vmax.f32 %v726_v55, 0.0 }
  0xe6   : > { %v1101_v60 = vpack.c.bf16 %v750_v58, %v749_v56  ;;  %v1121_v61 = vpack.c.bf16 %v758_v59, %v757_v57 }
  0xe8   : > { %1165 = vst [vmem:[%s1356_s17 + $0x18] sm:$0xff] %v1101_v60   ;;  %v585_v0 = vpop.f32.mrf.mxu2  ;;  %v605_v1 = vpop.f32.mrf.mxu3 }
  0xe9   : > { %1169 = vst [vmem:[%s1356_s17 + $0x38] sm:$0xff] %v1121_v61   ;;  %v734_v2 = vadd.f32 %v1345_v26, %v585_v0  ;;  %v742_v3 = vadd.f32 %v1345_v26, %v605_v1 }
  0xeb   : > { %v766_v6 = vmax.f32 %v734_v2, 0.0  ;;  %v774_v7 = vmax.f32 %v742_v3, 0.0 }
  0xed   : > { %v1141_v8 = vpack.c.bf16 %v766_v6, %v765_v4  ;;  %v1161_v9 = vpack.c.bf16 %v774_v7, %v773_v5 }
  0xef   : > { %1173 = vst [vmem:[%s1356_s17 + $0x58] sm:$0xff] %v1141_v8  }
  0xf0   : > { %1177 = vst [vmem:[%s1356_s17 + $0x78] sm:$0xff] %v1161_v9  }
  0xf1 PF: > { %s13_s14 = sadd.s32 1, %s1249_s14   ;;  %s1415_s12 = smov %s1245_s13 }
  0xf2   : > { %p10_p5 = scmp.ge.s32.totalorder %s13_s14, 4   ;;  %s1416_s13 = smov %s1418_s15 }
  0xf4   :  { %12 = sbr.rel (!%p10_p5) target bundleno = 2 (0x2), region = 76 }

// kernel: osblock_forward.6
= control target key start
LH: loop header
LB: loop body
LE: loop exit
PB: predicated region body
PF: predicated region fallthrough
CT: control target
= control target key end

     0   :  { %s1613_s12 = smov 0   ;;  %s1615_s13 = smov 0   ;;  %s1822_s0 = inlined_call_operand.vmem [shape: bf16[512,256], index: 0, kind: input, shape index: {}]   ;;  %s1823_s1 = inlined_call_operand.vmem [shape: bf16[256,128], index: 1, kind: input, shape index: {}]   ;;  %s1824_s2 = inlined_call_operand.vmem [shape: f32[1,128], index: 2, kind: input, shape index: {}]   ;;  %s1825_s3 = inlined_call_operand.vmem [shape: bf16[512,128], index: 3, kind: output, shape index: {}]  }
   0x1   :  { %s1617_s14 = smov 0  }
   0x2 LB: > { %s32_s15 = sadd.s32 1, %s1587_s13  ;;  %p1184_p0 = scmp.ge.s32.totalorder %s1591_s14, 1  ;;  %s1591_s14 = sphi %s1617_s14, %s13_s14   ;;  %s1587_s13 = sphi %s1615_s13, %s1827_s13   ;;  %s1583_s12 = sphi %s1613_s12, %s1826_s12  }
   0x3   : > { %p34_p1 = scmp.ge.s32.totalorder %s32_s15, 2  ;;  %p191_p2 = scmp.lt.s32.totalorder %s1591_s14, 3 }
   0x5   : > { %s1829_s15 = smov (%p34_p1, %s32_s15), 0  ;;  %p192_p3 = pnand %p1184_p0, %p191_p2 }
   0x6   : > { %s1185_s28 = sshll.u32 (!%p192_p3), %s1583_s12, 5 }
   0x7   : > { %195 = sbr.rel (%p192_p3) target bundleno = 306 (0x132), region = 32  ;;  %p236_p4 = scmp.lt.s32.totalorder (!%p192_p3), %s1185_s28, 63 }
   0xc   : > { %v1424_v0 = vld [vmem:[%s1823_s1 + $0x38] sm:$0xff]  ;;  %v1423_v2 = vld [vmem:[%s1823_s1 + $0x30] sm:$0xff]  ;;  %v1422_v4 = vld [vmem:[%s1823_s1 + $0x28] sm:$0xff]  ;;  %s1831_s28 = smov (!%p236_p4, %s1185_s28), 63 }
   0xd   : > { %v1432_v1 = vld [vmem:[%s1823_s1 + $0x78] sm:$0xff]  ;;  %655 = vmatpush.bf16.msra.mxu0 %v1424_v0  ;;  %1528 = vmatpush.bf16.msra.mxu2 %v1424_v0  ;;  %v1431_v3 = vld [vmem:[%s1823_s1 + $0x70] sm:$0xff]  ;;  %v1430_v5 = vld [vmem:[%s1823_s1 + $0x68] sm:$0xff]  ;;  %s1384_s17 = sshll.u32 %s1831_s28, 3  ;;  %s1189_s5 = sshll.u32 %s1831_s28, 2 }
   0xe   : > { %744 = vmatpush.bf16.msra.mxu1 %v1432_v1  ;;  %1536 = vmatpush.bf16.msra.mxu3 %v1432_v1  ;;  %v1421_v6 = vld [vmem:[%s1823_s1 + $0x20] sm:$0xff]  ;;  %v1420_v8 = vld [vmem:[%s1823_s1 + $0x18] sm:$0xff]  ;;  %v1419_v10 = vld [vmem:[%s1823_s1 + $0x10] sm:$0xff]  ;;  %s1679_s22 = scalar_lea.vmem %s1822_s0, %s1384_s17  ;;  %s1765_s8 = scalar_lea.vmem %s1825_s3, %s1189_s5 }
   0xf   : > { %v1429_v7 = vld [vmem:[%s1823_s1 + $0x60] sm:$0xff]  ;;  %v1428_v9 = vld [vmem:[%s1823_s1 + $0x58] sm:$0xff]  ;;  %v1427_v11 = vld [vmem:[%s1823_s1 + $0x50] sm:$0xff] }
  0x10   : > { %v1418_v12 = vld [vmem:[%s1823_s1 + $0x8] sm:$0xff]  ;;  %v1417_v14 = vld [vmem:[%s1823_s1] sm:$0xff]  ;;  %v1200_v28 = vld [vmem:[%s1679_s22 + $0x10] sm:$0xf] }
  0x11   : > { %656 = vmatpush.bf16.msra.mxu0 %v1423_v2  ;;  %1529 = vmatpush.bf16.msra.mxu2 %v1423_v2  ;;  %v1426_v13 = vld [vmem:[%s1823_s1 + $0x48] sm:$0xff]  ;;  %v1425_v15 = vld [vmem:[%s1823_s1 + $0x40] sm:$0xff]  ;;  %v1388_v29 = vld [vmem:[%s1679_s22 + $0x14] sm:$0xf0] }
  0x12   : > { %745 = vmatpush.bf16.msra.mxu1 %v1431_v3  ;;  %1537 = vmatpush.bf16.msra.mxu3 %v1431_v3  ;;  %v1192_v16 = vld [vmem:[%s1679_s22] sm:$0xf]  ;;  %v1386_v17 = vld [vmem:[%s1679_s22 + $0x4] sm:$0xf0]  ;;  %v1385_v20 = vld [vmem:[%s1679_s22 + $0x4] sm:$0xf]  ;;  %v1201_v36 = vor.u32 %v1388_v29, %v1200_v28 }
  0x13   : > { %v1256_v18 = vld [vmem:[%s1679_s22 + $0x80] sm:$0xf]  ;;  %v1402_v19 = vld [vmem:[%s1679_s22 + $0x84] sm:$0xf0]  ;;  %v1194_v21 = vld [vmem:[%s1679_s22 + $0x8] sm:$0xf0]  ;;  %v1193_v24 = vor.u32 %v1386_v17, %v1192_v16 }
  0x14   : > { %v1401_v22 = vld [vmem:[%s1679_s22 + $0x84] sm:$0xf]  ;;  %v1258_v23 = vld [vmem:[%s1679_s22 + $0x88] sm:$0xf0]  ;;  %v1257_v25 = vor.u32 %v1402_v19, %v1256_v18  ;;  %v1197_v26 = vor.u32 %v1385_v20, %v1194_v21  ;;  %v1264_v30 = vld [vmem:[%s1679_s22 + $0x90] sm:$0xf] }
  0x15   : > { %657 = vmatpush.bf16.msra.mxu0 %v1422_v4  ;;  %1530 = vmatpush.bf16.msra.mxu2 %v1422_v4  ;;  %v1261_v27 = vor.u32 %v1401_v22, %v1258_v23  ;;  %v1404_v31 = vld [vmem:[%s1679_s22 + $0x94] sm:$0xf0]  ;;  %v1387_v32 = vld [vmem:[%s1679_s22 + $0x14] sm:$0xf]  ;;  %v1202_v33 = vld [vmem:[%s1679_s22 + $0x18] sm:$0xf0] }
  0x16   : > { %746 = vmatpush.bf16.msra.mxu1 %v1430_v5  ;;  %1538 = vmatpush.bf16.msra.mxu3 %v1430_v5  ;;  %v1403_v34 = vld [vmem:[%s1679_s22 + $0x94] sm:$0xf]  ;;  %v1266_v35 = vld [vmem:[%s1679_s22 + $0x98] sm:$0xf0]  ;;  %v1265_v37 = vor.u32 %v1404_v31, %v1264_v30  ;;  %v1205_v38 = vor.u32 %v1387_v32, %v1202_v33  ;;  %v1208_v40 = vld [vmem:[%s1679_s22 + $0x20] sm:$0xf] }
  0x17   : > { %v1269_v39 = vor.u32 %v1403_v34, %v1266_v35  ;;  %v1390_v41 = vld [vmem:[%s1679_s22 + $0x24] sm:$0xf0]  ;;  %v1272_v42 = vld [vmem:[%s1679_s22 + $0xa0] sm:$0xf]  ;;  %v1389_v44 = vld [vmem:[%s1679_s22 + $0x24] sm:$0xf] }
  0x18   : > { %v1406_v43 = vld [vmem:[%s1679_s22 + $0xa4] sm:$0xf0]  ;;  %v1210_v45 = vld [vmem:[%s1679_s22 + $0x28] sm:$0xf0]  ;;  %v1405_v46 = vld [vmem:[%s1679_s22 + $0xa4] sm:$0xf]  ;;  %v1209_v48 = vor.u32 %v1390_v41, %v1208_v40 }
  0x19   : > { %658 = vmatpush.bf16.msra.mxu0 %v1421_v6  ;;  %1531 = vmatpush.bf16.msra.mxu2 %v1421_v6  ;;  %v1274_v47 = vld [vmem:[%s1679_s22 + $0xa8] sm:$0xf0]  ;;  %v1273_v49 = vor.u32 %v1406_v43, %v1272_v42  ;;  %v1213_v50 = vor.u32 %v1389_v44, %v1210_v45  ;;  %v1216_v52 = vld [vmem:[%s1679_s22 + $0x30] sm:$0xf]  ;;  %v1392_v53 = vld [vmem:[%s1679_s22 + $0x34] sm:$0xf0] }
  0x1a   : > { %747 = vmatpush.bf16.msra.mxu1 %v1429_v7  ;;  %1539 = vmatpush.bf16.msra.mxu3 %v1429_v7  ;;  %v1277_v51 = vor.u32 %v1405_v46, %v1274_v47  ;;  %v1280_v54 = vld [vmem:[%s1679_s22 + $0xb0] sm:$0xf]  ;;  %v1408_v55 = vld [vmem:[%s1679_s22 + $0xb4] sm:$0xf0]  ;;  %v1391_v56 = vld [vmem:[%s1679_s22 + $0x34] sm:$0xf]  ;;  %v1217_v60 = vor.u32 %v1392_v53, %v1216_v52 }
  0x1b   : > { %v1218_v57 = vld [vmem:[%s1679_s22 + $0x38] sm:$0xf0]  ;;  %v1407_v58 = vld [vmem:[%s1679_s22 + $0xb4] sm:$0xf]  ;;  %v1281_v61 = vor.u32 %v1408_v55, %v1280_v54  ;;  %v1224_v0 = vld [vmem:[%s1679_s22 + $0x40] sm:$0xf] }
  0x1c   : > { %v1282_v59 = vld [vmem:[%s1679_s22 + $0xb8] sm:$0xf0]  ;;  %v1221_v62 = vor.u32 %v1391_v56, %v1218_v57  ;;  %v1394_v1 = vld [vmem:[%s1679_s22 + $0x44] sm:$0xf0]  ;;  %v1288_v2 = vld [vmem:[%s1679_s22 + $0xc0] sm:$0xf] }
  0x1d   : > { %659 = vmatpush.bf16.msra.mxu0 %v1420_v8  ;;  %1532 = vmatpush.bf16.msra.mxu2 %v1420_v8  ;;  %v1285_v63 = vor.u32 %v1407_v58, %v1282_v59  ;;  %v1410_v3 = vld [vmem:[%s1679_s22 + $0xc4] sm:$0xf0]  ;;  %v1393_v4 = vld [vmem:[%s1679_s22 + $0x44] sm:$0xf]  ;;  %v1226_v5 = vld [vmem:[%s1679_s22 + $0x48] sm:$0xf0]  ;;  %v1225_v8 = vor.u32 %v1394_v1, %v1224_v0 }
  0x1e   : > { %748 = vmatpush.bf16.msra.mxu1 %v1428_v9  ;;  %1540 = vmatpush.bf16.msra.mxu3 %v1428_v9  ;;  %v1409_v6 = vld [vmem:[%s1679_s22 + $0xc4] sm:$0xf]  ;;  %v1290_v7 = vld [vmem:[%s1679_s22 + $0xc8] sm:$0xf0]  ;;  %v1289_v9 = vor.u32 %v1410_v3, %v1288_v2  ;;  %v1395_v16 = vld [vmem:[%s1679_s22 + $0x54] sm:$0xf] }
  0x1f   : > { %v1234_v17 = vld [vmem:[%s1679_s22 + $0x58] sm:$0xf0]  ;;  %v1411_v18 = vld [vmem:[%s1679_s22 + $0xd4] sm:$0xf]  ;;  %v1397_v28 = vld [vmem:[%s1679_s22 + $0x64] sm:$0xf] }
  0x20   : > { %v1298_v19 = vld [vmem:[%s1679_s22 + $0xd8] sm:$0xf0]  ;;  %v1237_v22 = vor.u32 %v1395_v16, %v1234_v17  ;;  %v1242_v29 = vld [vmem:[%s1679_s22 + $0x68] sm:$0xf0]  ;;  %v1413_v30 = vld [vmem:[%s1679_s22 + $0xe4] sm:$0xf] }
  0x21   : > { %660 = vmatpush.bf16.msra.mxu0 %v1419_v10  ;;  %1533 = vmatpush.bf16.msra.mxu2 %v1419_v10  ;;  %v1229_v10 = vor.u32 %v1393_v4, %v1226_v5  ;;  %v1301_v23 = vor.u32 %v1411_v18, %v1298_v19  ;;  %v1306_v31 = vld [vmem:[%s1679_s22 + $0xe8] sm:$0xf0]  ;;  %v1245_v34 = vor.u32 %v1397_v28, %v1242_v29  ;;  %v1399_v40 = vld [vmem:[%s1679_s22 + $0x74] sm:$0xf]  ;;  %v1250_v41 = vld [vmem:[%s1679_s22 + $0x78] sm:$0xf0] }
  0x22   : > { %749 = vmatpush.bf16.msra.mxu1 %v1427_v11  ;;  %1541 = vmatpush.bf16.msra.mxu3 %v1427_v11  ;;  %v1293_v11 = vor.u32 %v1409_v6, %v1290_v7  ;;  %v1309_v35 = vor.u32 %v1413_v30, %v1306_v31  ;;  %v1415_v42 = vld [vmem:[%s1679_s22 + $0xf4] sm:$0xf]  ;;  %v1314_v43 = vld [vmem:[%s1679_s22 + $0xf8] sm:$0xf0]  ;;  %v1253_v46 = vor.u32 %v1399_v40, %v1250_v41 }
  0x23   : > { %v1317_v47 = vor.u32 %v1415_v42, %v1314_v43 }
  0x25   : > { %661 = vmatpush.bf16.msra.mxu0 %v1418_v12  ;;  %1534 = vmatpush.bf16.msra.mxu2 %v1418_v12  ;;  %v1232_v12 = vld [vmem:[%s1679_s22 + $0x50] sm:$0xf] }
  0x26   : > { %750 = vmatpush.bf16.msra.mxu1 %v1426_v13  ;;  %1542 = vmatpush.bf16.msra.mxu3 %v1426_v13  ;;  %v1396_v13 = vld [vmem:[%s1679_s22 + $0x54] sm:$0xf0] }
  0x27   : > { %v1233_v20 = vor.u32 %v1396_v13, %v1232_v12 }
  0x29   : > { %662 = vmatpush.bf16.msra.mxu0 %v1417_v14  ;;  %1535 = vmatpush.bf16.msra.mxu2 %v1417_v14  ;;  %v1296_v14 = vld [vmem:[%s1679_s22 + $0xd0] sm:$0xf] }
  0x2a   : > { %751 = vmatpush.bf16.msra.mxu1 %v1425_v15  ;;  %1543 = vmatpush.bf16.msra.mxu3 %v1425_v15  ;;  %v1412_v15 = vld [vmem:[%s1679_s22 + $0xd4] sm:$0xf0] }
  0x2b   : > { %v1297_v21 = vor.u32 %v1412_v15, %v1296_v14 }
  0x2c   : > { %663 = vmatmul.bf16.vlgmr.msra.gmra.mxu0 %v1193_v24  ;;  %703 = vmatmul.bf16.vlgmr.msra.gmra.mxu2 %v1257_v25  ;;  %v1240_v24 = vld [vmem:[%s1679_s22 + $0x60] sm:$0xf]  ;;  %v1398_v25 = vld [vmem:[%s1679_s22 + $0x64] sm:$0xf0] }
  0x2d   : > { %752 = vmatmul.bf16.vlgmr.msra.gmra.mxu1 %v1197_v26  ;;  %792 = vmatmul.bf16.vlgmr.msra.gmra.mxu3 %v1261_v27  ;;  %v1304_v26 = vld [vmem:[%s1679_s22 + $0xe0] sm:$0xf]  ;;  %v1414_v27 = vld [vmem:[%s1679_s22 + $0xe4] sm:$0xf0]  ;;  %v1241_v32 = vor.u32 %v1398_v25, %v1240_v24 }
  0x2e   : > { %v1305_v33 = vor.u32 %v1414_v27, %v1304_v26 }
  0x3c   : > { %668 = vmatmul.bf16.gmra.mxu0 %v1201_v36  ;;  %708 = vmatmul.bf16.gmra.mxu2 %v1265_v37  ;;  %v1248_v36 = vld [vmem:[%s1679_s22 + $0x70] sm:$0xf]  ;;  %v1400_v37 = vld [vmem:[%s1679_s22 + $0x74] sm:$0xf0] }
  0x3d   : > { %757 = vmatmul.bf16.gmra.mxu1 %v1205_v38  ;;  %797 = vmatmul.bf16.gmra.mxu3 %v1269_v39  ;;  %v1312_v38 = vld [vmem:[%s1679_s22 + $0xf0] sm:$0xf]  ;;  %v1416_v39 = vld [vmem:[%s1679_s22 + $0xf4] sm:$0xf0]  ;;  %v1249_v44 = vor.u32 %v1400_v37, %v1248_v36 }
  0x3e   : > { %v1313_v45 = vor.u32 %v1416_v39, %v1312_v38 }
  0x4c   : > { %673 = vmatmul.bf16.gmra.mxu0 %v1209_v48  ;;  %713 = vmatmul.bf16.gmra.mxu2 %v1273_v49 }
  0x4d   : > { %762 = vmatmul.bf16.gmra.mxu1 %v1213_v50  ;;  %802 = vmatmul.bf16.gmra.mxu3 %v1277_v51  ;;  %v1757_v51 = vld [vmem:[%s1824_s2] ss:$0 sm:$0xff] }
  0x5c   : > { %678 = vmatmul.bf16.gmra.mxu0 %v1217_v60  ;;  %718 = vmatmul.bf16.gmra.mxu2 %v1281_v61 }
  0x5d   : > { %767 = vmatmul.bf16.gmra.mxu1 %v1221_v62  ;;  %807 = vmatmul.bf16.gmra.mxu3 %v1285_v63 }
  0x6c   : > { %683 = vmatmul.bf16.gmra.mxu0 %v1225_v8  ;;  %723 = vmatmul.bf16.gmra.mxu2 %v1289_v9 }
  0x6d   : > { %772 = vmatmul.bf16.gmra.mxu1 %v1229_v10  ;;  %812 = vmatmul.bf16.gmra.mxu3 %v1293_v11 }
  0x7c   : > { %688 = vmatmul.bf16.gmra.mxu0 %v1233_v20  ;;  %728 = vmatmul.bf16.gmra.mxu2 %v1297_v21 }
  0x7d   : > { %777 = vmatmul.bf16.gmra.mxu1 %v1237_v22  ;;  %817 = vmatmul.bf16.gmra.mxu3 %v1301_v23 }
  0x8c   : > { %693 = vmatmul.bf16.gmra.mxu0 %v1241_v32  ;;  %733 = vmatmul.bf16.gmra.mxu2 %v1305_v33 }
  0x8d   : > { %782 = vmatmul.bf16.gmra.mxu1 %v1245_v34  ;;  %822 = vmatmul.bf16.gmra.mxu3 %v1309_v35 }
  0x9c   : > { %698 = vmatmul.bf16.gmra.mxu0 %v1249_v44  ;;  %738 = vmatmul.bf16.gmra.mxu2 %v1313_v45 }
  0x9d   : > { %787 = vmatmul.bf16.gmra.mxu1 %v1253_v46  ;;  %827 = vmatmul.bf16.gmra.mxu3 %v1317_v47 }
  0xa9   : > { %v664_v48 = vpop.f32.mrf.mxu0 }
  0xaa   : > { %v753_v49 = vpop.f32.mrf.mxu1 }
  0xab   : > { %v754_v50 = vadd.f32 %v753_v49, %v664_v48 }
  0xad   : > { %v936_v56 = vadd.f32 %v1757_v51, %v754_v50 }
  0xaf   : > { %v704_v52 = vpop.f32.mrf.mxu2  ;;  %v968_v60 = vmax.f32 %v936_v56, 0.0 }
  0xb0   : > { %v793_v53 = vpop.f32.mrf.mxu3 }
  0xb1   : > { %v666_v54 = vpop.f32.mrf.mxu0  ;;  %v794_v58 = vadd.f32 %v793_v53, %v704_v52 }
  0xb2   : > { %v755_v55 = vpop.f32.mrf.mxu1 }
  0xb3   : > { %v756_v57 = vadd.f32 %v755_v55, %v666_v54  ;;  %v952_v0 = vadd.f32 %v1757_v51, %v794_v58 }
  0xb5   : > { %v937_v59 = vadd.f32 %v1757_v51, %v756_v57  ;;  %v984_v6 = vmax.f32 %v952_v0, 0.0 }
  0xb7   : > { %v969_v61 = vmax.f32 %v937_v59, 0.0  ;;  %v706_v62 = vpop.f32.mrf.mxu2 }
  0xb8   : > { %v795_v63 = vpop.f32.mrf.mxu3 }
  0xb9   : > { %v1436_v1 = vpack.c.bf16 %v969_v61, %v968_v60  ;;  %v796_v2 = vadd.f32 %v795_v63, %v706_v62  ;;  %v669_v3 = vpop.f32.mrf.mxu0 }
  0xba   : > { %v758_v4 = vpop.f32.mrf.mxu1 }
  0xbb   : > { %1437 = vst [vmem:[%s1765_s8] sm:$0xff] %v1436_v1   ;;  %v953_v5 = vadd.f32 %v1757_v51, %v796_v2  ;;  %v759_v9 = vadd.f32 %v758_v4, %v669_v3 }
  0xbd   : > { %v985_v7 = vmax.f32 %v953_v5, 0.0  ;;  %v938_v14 = vadd.f32 %v1757_v51, %v759_v9 }
  0xbf   : > { %v1476_v8 = vpack.c.bf16 %v985_v7, %v984_v6  ;;  %v709_v10 = vpop.f32.mrf.mxu2  ;;  %v970_v18 = vmax.f32 %v938_v14, 0.0 }
  0xc0   : > { %v798_v11 = vpop.f32.mrf.mxu3 }
  0xc1   : > { %1520 = vst [vmem:[%s1765_s8 + $0x40] sm:$0xff] %v1476_v8   ;;  %v671_v12 = vpop.f32.mrf.mxu0  ;;  %v799_v16 = vadd.f32 %v798_v11, %v709_v10 }
  0xc2   : > { %v760_v13 = vpop.f32.mrf.mxu1 }
  0xc3   : > { %v761_v15 = vadd.f32 %v760_v13, %v671_v12  ;;  %v954_v22 = vadd.f32 %v1757_v51, %v799_v16 }
  0xc5   : > { %v939_v17 = vadd.f32 %v1757_v51, %v761_v15  ;;  %v986_v28 = vmax.f32 %v954_v22, 0.0 }
  0xc7   : > { %v971_v19 = vmax.f32 %v939_v17, 0.0  ;;  %v711_v20 = vpop.f32.mrf.mxu2 }
  0xc8   : > { %v800_v21 = vpop.f32.mrf.mxu3 }
  0xc9   : > { %v1441_v23 = vpack.c.bf16 %v971_v19, %v970_v18  ;;  %v801_v24 = vadd.f32 %v800_v21, %v711_v20  ;;  %v674_v25 = vpop.f32.mrf.mxu0 }
  0xca   : > { %v763_v26 = vpop.f32.mrf.mxu1 }
  0xcb   : > { %1513 = vst [vmem:[%s1765_s8 + $0x8] sm:$0xff] %v1441_v23   ;;  %v955_v27 = vadd.f32 %v1757_v51, %v801_v24  ;;  %v764_v31 = vadd.f32 %v763_v26, %v674_v25 }
  0xcd   : > { %v987_v29 = vmax.f32 %v955_v27, 0.0  ;;  %v940_v36 = vadd.f32 %v1757_v51, %v764_v31 }
  0xcf   : > { %v1481_v30 = vpack.c.bf16 %v987_v29, %v986_v28  ;;  %v714_v32 = vpop.f32.mrf.mxu2  ;;  %v972_v40 = vmax.f32 %v940_v36, 0.0 }
  0xd0   : > { %v803_v33 = vpop.f32.mrf.mxu3 }
  0xd1   : > { %1521 = vst [vmem:[%s1765_s8 + $0x48] sm:$0xff] %v1481_v30   ;;  %v676_v34 = vpop.f32.mrf.mxu0  ;;  %v804_v38 = vadd.f32 %v803_v33, %v714_v32 }
  0xd2   : > { %v765_v35 = vpop.f32.mrf.mxu1 }
  0xd3   : > { %v766_v37 = vadd.f32 %v765_v35, %v676_v34  ;;  %v956_v44 = vadd.f32 %v1757_v51, %v804_v38 }
  0xd5   : > { %v941_v39 = vadd.f32 %v1757_v51, %v766_v37  ;;  %v988_v50 = vmax.f32 %v956_v44, 0.0 }
  0xd7   : > { %v973_v41 = vmax.f32 %v941_v39, 0.0  ;;  %v716_v42 = vpop.f32.mrf.mxu2 }
  0xd8   : > { %v805_v43 = vpop.f32.mrf.mxu3 }
  0xd9   : > { %v1446_v45 = vpack.c.bf16 %v973_v41, %v972_v40  ;;  %v806_v46 = vadd.f32 %v805_v43, %v716_v42  ;;  %v679_v47 = vpop.f32.mrf.mxu0 }
  0xda   : > { %v768_v48 = vpop.f32.mrf.mxu1 }
  0xdb   : > { %1514 = vst [vmem:[%s1765_s8 + $0x10] sm:$0xff] %v1446_v45   ;;  %v957_v49 = vadd.f32 %v1757_v51, %v806_v46  ;;  %v769_v54 = vadd.f32 %v768_v48, %v679_v47 }
  0xdd   : > { %v989_v52 = vmax.f32 %v957_v49, 0.0  ;;  %v942_v59 = vadd.f32 %v1757_v51, %v769_v54 }
  0xdf   : > { %v1486_v53 = vpack.c.bf16 %v989_v52, %v988_v50  ;;  %v719_v55 = vpop.f32.mrf.mxu2  ;;  %v974_v63 = vmax.f32 %v942_v59, 0.0 }
  0xe0   : > { %v808_v56 = vpop.f32.mrf.mxu3 }
  0xe1   : > { %1522 = vst [vmem:[%s1765_s8 + $0x50] sm:$0xff] %v1486_v53   ;;  %v681_v57 = vpop.f32.mrf.mxu0  ;;  %v809_v61 = vadd.f32 %v808_v56, %v719_v55 }
  0xe2   : > { %v770_v58 = vpop.f32.mrf.mxu1 }
  0xe3   : > { %v771_v60 = vadd.f32 %v770_v58, %v681_v57  ;;  %v958_v3 = vadd.f32 %v1757_v51, %v809_v61 }
  0xe5   : > { %v943_v62 = vadd.f32 %v1757_v51, %v771_v60  ;;  %v990_v9 = vmax.f32 %v958_v3, 0.0 }
  0xe7   : > { %v975_v0 = vmax.f32 %v943_v62, 0.0  ;;  %v721_v1 = vpop.f32.mrf.mxu2 }
  0xe8   : > { %v810_v2 = vpop.f32.mrf.mxu3 }
  0xe9   : > { %v1451_v4 = vpack.c.bf16 %v975_v0, %v974_v63  ;;  %v811_v5 = vadd.f32 %v810_v2, %v721_v1  ;;  %v684_v6 = vpop.f32.mrf.mxu0 }
  0xea   : > { %v773_v7 = vpop.f32.mrf.mxu1 }
  0xeb   : > { %1515 = vst [vmem:[%s1765_s8 + $0x18] sm:$0xff] %v1451_v4   ;;  %v959_v8 = vadd.f32 %v1757_v51, %v811_v5  ;;  %v774_v12 = vadd.f32 %v773_v7, %v684_v6 }
  0xed   : > { %v991_v10 = vmax.f32 %v959_v8, 0.0  ;;  %v944_v17 = vadd.f32 %v1757_v51, %v774_v12 }
  0xef   : > { %v1491_v11 = vpack.c.bf16 %v991_v10, %v990_v9  ;;  %v724_v13 = vpop.f32.mrf.mxu2  ;;  %v976_v21 = vmax.f32 %v944_v17, 0.0 }
  0xf0   : > { %v813_v14 = vpop.f32.mrf.mxu3 }
  0xf1   : > { %1523 = vst [vmem:[%s1765_s8 + $0x58] sm:$0xff] %v1491_v11   ;;  %v686_v15 = vpop.f32.mrf.mxu0  ;;  %v814_v19 = vadd.f32 %v813_v14, %v724_v13 }
  0xf2   : > { %v775_v16 = vpop.f32.mrf.mxu1 }
  0xf3   : > { %v776_v18 = vadd.f32 %v775_v16, %v686_v15  ;;  %v960_v25 = vadd.f32 %v1757_v51, %v814_v19 }
  0xf5   : > { %v945_v20 = vadd.f32 %v1757_v51, %v776_v18  ;;  %v992_v31 = vmax.f32 %v960_v25, 0.0 }
  0xf7   : > { %v977_v22 = vmax.f32 %v945_v20, 0.0  ;;  %v726_v23 = vpop.f32.mrf.mxu2 }
  0xf8   : > { %v815_v24 = vpop.f32.mrf.mxu3 }
  0xf9   : > { %v1456_v26 = vpack.c.bf16 %v977_v22, %v976_v21  ;;  %v816_v27 = vadd.f32 %v815_v24, %v726_v23  ;;  %v689_v28 = vpop.f32.mrf.mxu0 }
  0xfa   : > { %v778_v29 = vpop.f32.mrf.mxu1 }
  0xfb   : > { %1516 = vst [vmem:[%s1765_s8 + $0x20] sm:$0xff] %v1456_v26   ;;  %v961_v30 = vadd.f32 %v1757_v51, %v816_v27  ;;  %v779_v34 = vadd.f32 %v778_v29, %v689_v28 }
  0xfd   : > { %v993_v32 = vmax.f32 %v961_v30, 0.0  ;;  %v946_v39 = vadd.f32 %v1757_v51, %v779_v34 }
  0xff   : > { %v1496_v33 = vpack.c.bf16 %v993_v32, %v992_v31  ;;  %v729_v35 = vpop.f32.mrf.mxu2  ;;  %v978_v43 = vmax.f32 %v946_v39, 0.0 }
 0x100   : > { %v818_v36 = vpop.f32.mrf.mxu3 }
 0x101   : > { %1524 = vst [vmem:[%s1765_s8 + $0x60] sm:$0xff] %v1496_v33   ;;  %v691_v37 = vpop.f32.mrf.mxu0  ;;  %v819_v41 = vadd.f32 %v818_v36, %v729_v35 }
 0x102   : > { %v780_v38 = vpop.f32.mrf.mxu1 }
 0x103   : > { %v781_v40 = vadd.f32 %v780_v38, %v691_v37  ;;  %v962_v47 = vadd.f32 %v1757_v51, %v819_v41 }
 0x105   : > { %v947_v42 = vadd.f32 %v1757_v51, %v781_v40  ;;  %v994_v54 = vmax.f32 %v962_v47, 0.0 }
 0x107   : > { %v979_v44 = vmax.f32 %v947_v42, 0.0  ;;  %v731_v45 = vpop.f32.mrf.mxu2 }
 0x108   : > { %v820_v46 = vpop.f32.mrf.mxu3 }
 0x109   : > { %v1461_v48 = vpack.c.bf16 %v979_v44, %v978_v43  ;;  %v821_v49 = vadd.f32 %v820_v46, %v731_v45  ;;  %v694_v50 = vpop.f32.mrf.mxu0 }
 0x10a   : > { %v783_v52 = vpop.f32.mrf.mxu1 }
 0x10b   : > { %1517 = vst [vmem:[%s1765_s8 + $0x28] sm:$0xff] %v1461_v48   ;;  %v963_v53 = vadd.f32 %v1757_v51, %v821_v49  ;;  %v784_v57 = vadd.f32 %v783_v52, %v694_v50 }
 0x10d   : > { %v995_v55 = vmax.f32 %v963_v53, 0.0  ;;  %v948_v62 = vadd.f32 %v1757_v51, %v784_v57 }
 0x10f   : > { %v1501_v56 = vpack.c.bf16 %v995_v55, %v994_v54  ;;  %v734_v58 = vpop.f32.mrf.mxu2  ;;  %v980_v2 = vmax.f32 %v948_v62, 0.0 }
 0x110   : > { %v823_v59 = vpop.f32.mrf.mxu3 }
 0x111   : > { %1525 = vst [vmem:[%s1765_s8 + $0x68] sm:$0xff] %v1501_v56   ;;  %v696_v60 = vpop.f32.mrf.mxu0  ;;  %v824_v0 = vadd.f32 %v823_v59, %v734_v58 }
 0x112   : > { %v785_v61 = vpop.f32.mrf.mxu1 }
 0x113   : > { %v786_v63 = vadd.f32 %v785_v61, %v696_v60  ;;  %v964_v6 = vadd.f32 %v1757_v51, %v824_v0 }
 0x115   : > { %v949_v1 = vadd.f32 %v1757_v51, %v786_v63  ;;  %v996_v12 = vmax.f32 %v964_v6, 0.0 }
 0x117   : > { %v981_v3 = vmax.f32 %v949_v1, 0.0  ;;  %v736_v4 = vpop.f32.mrf.mxu2 }
 0x118   : > { %v825_v5 = vpop.f32.mrf.mxu3 }
 0x119   : > { %v1466_v7 = vpack.c.bf16 %v981_v3, %v980_v2  ;;  %v826_v8 = vadd.f32 %v825_v5, %v736_v4  ;;  %v699_v9 = vpop.f32.mrf.mxu0 }
 0x11a   : > { %v788_v10 = vpop.f32.mrf.mxu1 }
 0x11b   : > { %1518 = vst [vmem:[%s1765_s8 + $0x30] sm:$0xff] %v1466_v7   ;;  %v965_v11 = vadd.f32 %v1757_v51, %v826_v8  ;;  %v789_v15 = vadd.f32 %v788_v10, %v699_v9 }
 0x11d   : > { %v997_v13 = vmax.f32 %v965_v11, 0.0  ;;  %v950_v20 = vadd.f32 %v1757_v51, %v789_v15 }
 0x11f   : > { %v1506_v14 = vpack.c.bf16 %v997_v13, %v996_v12  ;;  %v739_v16 = vpop.f32.mrf.mxu2  ;;  %v982_v24 = vmax.f32 %v950_v20, 0.0 }
 0x120   : > { %v828_v17 = vpop.f32.mrf.mxu3 }
 0x121   : > { %1526 = vst [vmem:[%s1765_s8 + $0x70] sm:$0xff] %v1506_v14   ;;  %v701_v18 = vpop.f32.mrf.mxu0  ;;  %v829_v22 = vadd.f32 %v828_v17, %v739_v16 }
 0x122   : > { %v790_v19 = vpop.f32.mrf.mxu1 }
 0x123   : > { %v791_v21 = vadd.f32 %v790_v19, %v701_v18  ;;  %v966_v28 = vadd.f32 %v1757_v51, %v829_v22 }
 0x125   : > { %v951_v23 = vadd.f32 %v1757_v51, %v791_v21  ;;  %v998_v32 = vmax.f32 %v966_v28, 0.0 }
 0x127   : > { %v983_v25 = vmax.f32 %v951_v23, 0.0  ;;  %v741_v26 = vpop.f32.mrf.mxu2 }
 0x128   : > { %v830_v27 = vpop.f32.mrf.mxu3 }
 0x129   : > { %v1471_v29 = vpack.c.bf16 %v983_v25, %v982_v24  ;;  %v831_v30 = vadd.f32 %v830_v27, %v741_v26 }
 0x12b   : > { %1519 = vst [vmem:[%s1765_s8 + $0x38] sm:$0xff] %v1471_v29   ;;  %v967_v31 = vadd.f32 %v1757_v51, %v831_v30 }
 0x12d   : > { %v999_v33 = vmax.f32 %v967_v31, 0.0 }
 0x12f   : > { %v1511_v34 = vpack.c.bf16 %v999_v33, %v998_v32 }
 0x131   : > { %1527 = vst [vmem:[%s1765_s8 + $0x78] sm:$0xff] %v1511_v34  }
 0x132 PF: > { %s13_s14 = sadd.s32 1, %s1591_s14   ;;  %s1826_s12 = smov %s1587_s13 }
 0x133   : > { %p10_p5 = scmp.ge.s32.totalorder %s13_s14, 4   ;;  %s1827_s13 = smov %s1829_s15 }
 0x135   :  { %12 = sbr.rel (!%p10_p5) target bundleno = 2 (0x2), region = 76 }

// kernel: osblock_forward.7
= control target key start
LH: loop header
LB: loop body
LE: loop exit
PB: predicated region body
PF: predicated region fallthrough
CT: control target
= control target key end

     0   :  { %s271_s1 = inlined_call_operand.vmem [shape: f32[128,128], index: 1, kind: input, shape index: {}]   ;;  %s272_s3 = inlined_call_operand.vmem [shape: f32[128,128], index: 3, kind: input, shape index: {}]   ;;  %s273_s2 = inlined_call_operand.vmem [shape: f32[1,128], index: 2, kind: input, shape index: {}]   ;;  %s274_s0 = inlined_call_operand.vmem [shape: f32[8,128], index: 0, kind: input, shape index: {}]   ;;  %s275_s4 = inlined_call_operand.vmem [shape: f32[1,128], index: 4, kind: input, shape index: {}]   ;;  %s276_s5 = inlined_call_operand.vmem [shape: f32[8,128], index: 5, kind: output, shape index: {}]  }
   0x1   :  { %v36_v0 = vld [vmem:[%s271_s1 + $0x78] sm:$0xff]  ;;  %v35_v1 = vld [vmem:[%s271_s1 + $0x70] sm:$0xff]  ;;  %v34_v2 = vld [vmem:[%s271_s1 + $0x68] sm:$0xff] }
   0x2   :  { %41 = vmatpush.msra.mxu0 %v36_v0  ;;  %v33_v3 = vld [vmem:[%s271_s1 + $0x60] sm:$0xff]  ;;  %v77_v4 = vld [vmem:[%s272_s3 + $0x78] sm:$0xff]  ;;  %v76_v6 = vld [vmem:[%s272_s3 + $0x70] sm:$0xff] }
   0x3   :  { %v32_v5 = vld [vmem:[%s271_s1 + $0x58] sm:$0xff]  ;;  %82 = vmatpush.msra.mxu1 %v77_v4  ;;  %v75_v7 = vld [vmem:[%s272_s3 + $0x68] sm:$0xff]  ;;  %v31_v8 = vld [vmem:[%s271_s1 + $0x50] sm:$0xff] }
   0x4   :  { %42 = vmatpush.msra.mxu0 %v35_v1  ;;  %v74_v9 = vld [vmem:[%s272_s3 + $0x60] sm:$0xff]  ;;  %v30_v10 = vld [vmem:[%s271_s1 + $0x48] sm:$0xff]  ;;  %v73_v11 = vld [vmem:[%s272_s3 + $0x58] sm:$0xff] }
   0x5   :  { %83 = vmatpush.msra.mxu1 %v76_v6  ;;  %v29_v12 = vld [vmem:[%s271_s1 + $0x40] sm:$0xff]  ;;  %v72_v13 = vld [vmem:[%s272_s3 + $0x50] sm:$0xff]  ;;  %v28_v14 = vld [vmem:[%s271_s1 + $0x38] sm:$0xff] }
   0x6   :  { %43 = vmatpush.msra.mxu0 %v34_v2  ;;  %v71_v15 = vld [vmem:[%s272_s3 + $0x48] sm:$0xff]  ;;  %v27_v16 = vld [vmem:[%s271_s1 + $0x30] sm:$0xff]  ;;  %v70_v17 = vld [vmem:[%s272_s3 + $0x40] sm:$0xff] }
   0x7   :  { %84 = vmatpush.msra.mxu1 %v75_v7  ;;  %v26_v18 = vld [vmem:[%s271_s1 + $0x28] sm:$0xff]  ;;  %v69_v19 = vld [vmem:[%s272_s3 + $0x38] sm:$0xff]  ;;  %v25_v20 = vld [vmem:[%s271_s1 + $0x20] sm:$0xff] }
   0x8   :  { %44 = vmatpush.msra.mxu0 %v33_v3  ;;  %v68_v21 = vld [vmem:[%s272_s3 + $0x30] sm:$0xff]  ;;  %v24_v22 = vld [vmem:[%s271_s1 + $0x18] sm:$0xff]  ;;  %v67_v23 = vld [vmem:[%s272_s3 + $0x28] sm:$0xff] }
   0x9   :  { %85 = vmatpush.msra.mxu1 %v74_v9  ;;  %v23_v24 = vld [vmem:[%s271_s1 + $0x10] sm:$0xff]  ;;  %v66_v25 = vld [vmem:[%s272_s3 + $0x20] sm:$0xff]  ;;  %v22_v26 = vld [vmem:[%s271_s1 + $0x8] sm:$0xff] }
   0xa   :  { %45 = vmatpush.msra.mxu0 %v32_v5  ;;  %v65_v27 = vld [vmem:[%s272_s3 + $0x18] sm:$0xff]  ;;  %v21_v28 = vld [vmem:[%s271_s1] sm:$0xff]  ;;  %v64_v30 = vld [vmem:[%s272_s3 + $0x10] sm:$0xff] }
   0xb   :  { %86 = vmatpush.msra.mxu1 %v73_v11  ;;  %v20_v29 = vld [vmem:[%s274_s0] sm:$0xff]  ;;  %v63_v31 = vld [vmem:[%s272_s3 + $0x8] sm:$0xff] }
   0xc   :  { %46 = vmatpush.msra.mxu0 %v31_v8  ;;  %v62_v32 = vld [vmem:[%s272_s3] sm:$0xff] }
   0xd   :  { %87 = vmatpush.msra.mxu1 %v72_v13  ;;  %v127_v33 = vld [vmem:[%s273_s2] ss:$0 sm:$0xff] }
   0xe   :  { %47 = vmatpush.msra.mxu0 %v30_v10  ;;  %v128_v37 = vld [vmem:[%s275_s4] ss:$0 sm:$0xff] }
   0xf   :  { %88 = vmatpush.msra.mxu1 %v71_v15 }
  0x10   :  { %48 = vmatpush.msra.mxu0 %v29_v12 }
  0x11   :  { %89 = vmatpush.msra.mxu1 %v70_v17 }
  0x12   :  { %49 = vmatpush.msra.mxu0 %v28_v14 }
  0x13   :  { %90 = vmatpush.msra.mxu1 %v69_v19 }
  0x14   :  { %50 = vmatpush.msra.mxu0 %v27_v16 }
  0x15   :  { %91 = vmatpush.msra.mxu1 %v68_v21 }
  0x16   :  { %51 = vmatpush.msra.mxu0 %v26_v18 }
  0x17   :  { %92 = vmatpush.msra.mxu1 %v67_v23 }
  0x18   :  { %52 = vmatpush.msra.mxu0 %v25_v20 }
  0x19   :  { %93 = vmatpush.msra.mxu1 %v66_v25 }
  0x1a   :  { %53 = vmatpush.msra.mxu0 %v24_v22 }
  0x1b   :  { %94 = vmatpush.msra.mxu1 %v65_v27 }
  0x1c   :  { %54 = vmatpush.msra.mxu0 %v23_v24 }
  0x1d   :  { %95 = vmatpush.msra.mxu1 %v64_v30 }
  0x1e   :  { %55 = vmatpush.msra.mxu0 %v22_v26 }
  0x1f   :  { %96 = vmatpush.msra.mxu1 %v63_v31 }
  0x20   :  { %56 = vmatpush.msra.mxu0 %v21_v28 }
  0x21   :  { %57 = vmatmul.f32.vlgmr.msra.gmra.mxu0 %v20_v29  ;;  %97 = vmatpush.msra.mxu1 %v62_v32 }
  0x9e   :  { %v58_v34 = vpop.f32.mrf.mxu0 }
  0x9f   :  { %v59_v35 = vadd.f32 %v127_v33, %v58_v34 }
  0xa1   :  { %v61_v36 = vmax.f32 %v59_v35, 0.0 }
  0xa3   :  { %98 = vmatmul.f32.vlgmr.msra.gmra.mxu1 %v61_v36 }
 0x120   :  { %v99_v38 = vpop.f32.mrf.mxu1 }
 0x121   :  { %v100_v39 = vadd.f32 %v128_v37, %v99_v38 }
 0x123   :  { %v126_v40 = vmul.f32 -1.442695, %v100_v39 }
 0x125   :  { %129 = vpow2.f32 %v126_v40 }
 0x12b   :  { %v130_v41 = vpop.eup %129 }
 0x12c   :  { %v105_v42 = vadd.f32 1.0, %v130_v41 }
 0x12e   :  { %131 = vrcp.f32 %v105_v42  ;;  %v117_v46 = vand.u32 2147483648, %v105_v42  ;;  %v115_v48 = vand.u32 2147483647, %v105_v42  ;;  %vm111_vm1 = vweird.f32 %v105_v42 }
 0x130   :  { %v118_v50 = vor.u32 1.1754944e-38, %v117_v46  ;;  %vm116_vm3 = vcmp.eq.f32.partialorder %v115_v48, 8.507059e+37 }
 0x134   :  { %v132_v43 = vpop.eup %131 }
 0x135   :  { %v107_v44 = vmul.f32 %v132_v43, %v105_v42  ;;  %vm112_vm0 = vweird.f32 %v132_v43 }
 0x136   :  { %vm113_vm2 = vmor %vm111_vm1, %vm112_vm0 }
 0x137   :  { %v108_v45 = vsub.f32 1.0, %v107_v44 }
 0x139   :  { %v109_v47 = vmul.f32 %v132_v43, %v108_v45 }
 0x13b   :  { %v110_v49 = vadd.f32 %v132_v43, %v109_v47 }
 0x13d   :  { %v114_v51 = vsel %vm113_vm2, %v132_v43, %v110_v49 }
 0x13e   :  { %v119_v52 = vsel %vm116_vm3, %v118_v50, %v114_v51 }
 0x13f   :  { %121 = vst [vmem:[%s276_s5] sm:$0xff] %v119_v52 }

// kernel: osblock_forward.9
= control target key start
LH: loop header
LB: loop body
LE: loop exit
PB: predicated region body
PF: predicated region fallthrough
CT: control target
= control target key end

     0   :  { %10 = vsyncpa [#allocation4], 0  ;;  %s1929_s0 = inlined_call_operand.vmem [shape: bf16[2,256,128], index: 0, kind: input, shape index: {}]   ;;  %s1930_s1 = inlined_call_operand.vmem [shape: f32[2,1,128], index: 1, kind: input, shape index: {}]   ;;  %s1931_s2 = inlined_call_operand.vmem [shape: bf16[128,128], index: 2, kind: input, shape index: {}]   ;;  %s1932_s3 = inlined_call_operand.vmem [shape: f32[1,128], index: 3, kind: input, shape index: {}]   ;;  %s1933_s4 = inlined_call_operand.vmem [shape: bf16[2,256,128], index: 4, kind: input, shape index: {}]   ;;  %s1934_s5 = inlined_call_operand.hbm [shape: f32[2,256,128], index: 5, kind: output, shape index: {}]  }
   0x1   :  { %12 = vsyncpa [#allocation4 + $0x1], 0  ;;  %s1648_s18 = smov 0   ;;  %s1650_s19 = smov 0  }
   0x2   :  { %s1652_s20 = smov 0   ;;  %s1654_s21 = smov 0  }
   0x3   :  { %s1656_s22 = smov 0   ;;  %s1658_s23 = smov 0  }
   0x4 LB: > { %s1235_s24 = sadd.s32 4294967295, %s1614_s23   ;;  %s1236_s25 = sadd.s32 4294967294, %s1614_s23   ;;  %s1614_s23 = sphi %s1658_s23, %s18_s23   ;;  %s1610_s22 = sphi %s1656_s22, %s1941_s22   ;;  %s1606_s21 = sphi %s1654_s21, %s1940_s21   ;;  %s1602_s20 = sphi %s1652_s20, %s1939_s20   ;;  %s1598_s19 = sphi %s1650_s19, %s1938_s19   ;;  %s1594_s18 = sphi %s1648_s18, %s1937_s18  }
   0x5   : > { %s44_s26 = sadd.s32 1, %s1610_s22  ;;  %s197_s27 = sadd.s32 1, %s1602_s20 }
   0x6   : > { %p46_p0 = scmp.ge.s32.totalorder %s44_s26, 2  ;;  %p207_p1 = scmp.ne.s32.totalorder %s1602_s20, %s1598_s19 }
   0x7   : > { %p208_p2 = scmp.eq.s32.totalorder %s1235_s24, 1  ;;  %p213_p3 = scmp.ne.s32.totalorder %s1598_s19, %s1594_s18 }
   0x8   : > { %s1943_s26 = smov (%p46_p0, %s44_s26), 0  ;;  %p214_p5 = scmp.eq.s32.totalorder %s1236_s25, 1 }
   0x9   : > { %p1688_p4 = por %p208_p2, %p207_p1  ;;  %s190_s29 = ssub.s32 %s1610_s22, %s1943_s26 }
   0xa   : > { %p1241_p6 = scmp.ge.s32.totalorder %s1614_s23, 1  ;;  %p195_p7 = scmp.eq.s32.totalorder %s190_s29, 0 }
   0xb   : > { %p1695_p8 = por %p214_p5, %p213_p3  ;;  %p291_p9 = scmp.lt.s32.totalorder %s1614_s23, 3 }
   0xc   : > { %s1701_s6 = scalar_select %p195_p7, %s1602_s20, %s197_s27  }
   0xd   : > { %p292_p10 = pnand %p1241_p6, %p291_p9 }
   0xe   : > { %p356_p11 = scmp.lt.s32.totalorder (!%p292_p10), %s1606_s21, 1  ;;  %s352_s8 = sand.u32 (!%p292_p10), 1, %s1598_s19  }
   0xf   : > { %295 = sbr.rel (%p292_p10) target bundleno = 254 (0xfe), region = 40  ;;  %s1556_s29 = scalar_lea.hbm (!%p292_p10), %s1934_s5, 512 }
  0x14   : > { %v1293_v0 = vld [vmem:[%s1931_s2 + $0x38] sm:$0xff]  ;;  %v1292_v1 = vld [vmem:[%s1931_s2 + $0x30] sm:$0xff]  ;;  %s1711_s11 = scalar_select %p356_p11, %s1606_s21, 1  ;;  %v1291_v2 = vld [vmem:[%s1931_s2 + $0x28] sm:$0xff] }
  0x15   : > { %648 = vmatpush.bf16.msra.mxu0 %v1293_v0  ;;  %1453 = vmatpush.bf16.msra.mxu1 %v1293_v0  ;;  %v1290_v3 = vld [vmem:[%s1931_s2 + $0x20] sm:$0xff]  ;;  %v1289_v4 = vld [vmem:[%s1931_s2 + $0x18] sm:$0xff]  ;;  %v1288_v6 = vld [vmem:[%s1931_s2 + $0x10] sm:$0xff] }
  0x16   : > { %1454 = vmatpush.bf16.msra.mxu2 %v1293_v0  ;;  %1455 = vmatpush.bf16.msra.mxu3 %v1293_v0  ;;  %s373_s14 = scalar_lea.vmem %s1930_s1, %s1711_s11  ;;  %s1284_s25 = sshll.u32 %s1711_s11, 7  ;;  %v1287_v16 = vld [vmem:[%s1931_s2 + $0x8] sm:$0xff]  ;;  %v1286_v25 = vld [vmem:[%s1931_s2] sm:$0xff] }
  0x17   : > { %s1732_s9 = scalar_lea.vmem %s1929_s0, %s1284_s25  ;;  %v1741_v11 = vld [vmem:[%s373_s14] ss:$0 sm:$0xff]  ;;  %s1798_s27 = scalar_lea.vmem %s1933_s4, %s1284_s25 }
  0x18   : > { %v1296_v5 = vld [vmem:[%s1732_s9] sm:$0xff]   ;;  %v1423_v33 = vld [vmem:[%s1732_s9 + $0x8] sm:$0xff]   ;;  %v1424_v57 = vld [vmem:[%s1732_s9 + $0x10] sm:$0xff]   ;;  %s1242_s11 = sshll.u32 %s352_s8, 8  ;;  %s1065_s14 = scalar_lea.sflag [#allocation4], %s352_s8 }
  0x19   : > { %649 = vmatpush.bf16.msra.mxu0 %v1292_v1  ;;  %1456 = vmatpush.bf16.msra.mxu1 %v1292_v1  ;;  %v1426_v7 = vld [vmem:[%s1732_s9 + $0x20] sm:$0xff]   ;;  %v1297_v10 = vunpack.c.l.bf16 %v1296_v5  ;;  %v1298_v12 = vunpack.c.h.bf16 %v1296_v5  ;;  %v1427_v34 = vld [vmem:[%s1732_s9 + $0x28] sm:$0xff]   ;;  %v1301_v37 = vunpack.c.l.bf16 %v1423_v33  ;;  %v1302_v38 = vunpack.c.h.bf16 %v1423_v33  ;;  %v1428_v58 = vld [vmem:[%s1732_s9 + $0x30] sm:$0xff]   ;;  %s1816_s25 = scalar_lea.vmem [#allocation3], %s1242_s11 }
  0x1a   : > { %1457 = vmatpush.bf16.msra.mxu2 %v1292_v1  ;;  %1458 = vmatpush.bf16.msra.mxu3 %v1292_v1  ;;  %v1430_v8 = vld [vmem:[%s1732_s9 + $0x40] sm:$0xff]   ;;  %v1313_v13 = vunpack.c.l.bf16 %v1426_v7  ;;  %v1314_v14 = vunpack.c.h.bf16 %v1426_v7  ;;  %v1431_v35 = vld [vmem:[%s1732_s9 + $0x48] sm:$0xff]   ;;  %v1317_v39 = vunpack.c.l.bf16 %v1427_v34  ;;  %v1318_v40 = vunpack.c.h.bf16 %v1427_v34  ;;  %v1432_v59 = vld [vmem:[%s1732_s9 + $0x50] sm:$0xff]   ;;  %s1080_s13 = sshll.u32 %s1816_s25, 4  ;;  %s1081_s13 = int_to_ptr.vmem [resolvable:$true] %s1080_s13 }
  0x1b   : > { %v1434_v9 = vld [vmem:[%s1732_s9 + $0x60] sm:$0xff]   ;;  %v1329_v15 = vunpack.c.l.bf16 %v1430_v8  ;;  %v1330_v17 = vunpack.c.h.bf16 %v1430_v8  ;;  %v504_v20 = vmul.f32 %v1741_v11, %v1297_v10  ;;  %v505_v21 = vmul.f32 %v1741_v11, %v1298_v12  ;;  %v1435_v36 = vld [vmem:[%s1732_s9 + $0x68] sm:$0xff]   ;;  %v1436_v60 = vld [vmem:[%s1732_s9 + $0x70] sm:$0xff]  }
  0x1c   : > { %v1345_v18 = vunpack.c.l.bf16 %v1434_v9  ;;  %v1346_v19 = vunpack.c.h.bf16 %v1434_v9  ;;  %v512_v22 = vmul.f32 %v1741_v11, %v1313_v13  ;;  %v513_v23 = vmul.f32 %v1741_v11, %v1314_v14 }
  0x1d   : > { %650 = vmatpush.bf16.msra.mxu0 %v1291_v2  ;;  %1459 = vmatpush.bf16.msra.mxu1 %v1291_v2  ;;  %v520_v24 = vmul.f32 %v1741_v11, %v1329_v15  ;;  %v521_v26 = vmul.f32 %v1741_v11, %v1330_v17  ;;  %v568_v29 = vpack.c.bf16 %v505_v21, %v504_v20  ;;  %v1333_v41 = vunpack.c.l.bf16 %v1431_v35  ;;  %v1433_v20 = vld [vmem:[%s1732_s9 + $0x58] sm:$0xff]  }
  0x1e   : > { %1460 = vmatpush.bf16.msra.mxu2 %v1291_v2  ;;  %1461 = vmatpush.bf16.msra.mxu3 %v1291_v2  ;;  %v528_v27 = vmul.f32 %v1741_v11, %v1345_v18  ;;  %v529_v28 = vmul.f32 %v1741_v11, %v1346_v19  ;;  %v572_v30 = vpack.c.bf16 %v513_v23, %v512_v22  ;;  %v1334_v42 = vunpack.c.h.bf16 %v1431_v35  ;;  %v1425_v18 = vld [vmem:[%s1732_s9 + $0x18] sm:$0xff]  }
  0x1f   : > { %v576_v31 = vpack.c.bf16 %v521_v26, %v520_v24  ;;  %v1349_v43 = vunpack.c.l.bf16 %v1435_v36  ;;  %v1350_v44 = vunpack.c.h.bf16 %v1435_v36  ;;  %v506_v45 = vmul.f32 %v1741_v11, %v1301_v37  ;;  %v1429_v19 = vld [vmem:[%s1732_s9 + $0x38] sm:$0xff]  }
  0x20   : > { %v580_v32 = vpack.c.bf16 %v529_v28, %v528_v27  ;;  %v507_v46 = vmul.f32 %v1741_v11, %v1302_v38  ;;  %v514_v47 = vmul.f32 %v1741_v11, %v1317_v39  ;;  %v515_v48 = vmul.f32 %v1741_v11, %v1318_v40  ;;  %v1437_v21 = vld [vmem:[%s1732_s9 + $0x78] sm:$0xff]   ;;  %s1294_s9 = sshll.u32 %s1606_s21, 8 }
  0x21   : > { %651 = vmatpush.bf16.msra.mxu0 %v1290_v3  ;;  %1462 = vmatpush.bf16.msra.mxu1 %v1290_v3  ;;  %v522_v49 = vmul.f32 %v1741_v11, %v1333_v41  ;;  %v523_v50 = vmul.f32 %v1741_v11, %v1334_v42  ;;  %v530_v51 = vmul.f32 %v1741_v11, %v1349_v43  ;;  %v1305_v61 = vunpack.c.l.bf16 %v1424_v57  ;;  %v1360_v42 = vld [vmem:[%s1798_s27] sm:$0xff]   ;;  %s1079_s21 = scalar_lea.hbm %s1934_s5, %s1294_s9 }
  0x22   : > { %1463 = vmatpush.bf16.msra.mxu2 %v1290_v3  ;;  %1464 = vmatpush.bf16.msra.mxu3 %v1290_v3  ;;  %v531_v52 = vmul.f32 %v1741_v11, %v1350_v44  ;;  %v569_v53 = vpack.c.bf16 %v507_v46, %v506_v45  ;;  %v573_v54 = vpack.c.bf16 %v515_v48, %v514_v47  ;;  %v1306_v62 = vunpack.c.h.bf16 %v1424_v57  ;;  %v1441_v43 = vld [vmem:[%s1798_s27 + $0x20] sm:$0xff]   ;;  %s1082_s15 = sshll.u32 %s1079_s21, 4  ;;  %s1083_s15 = int_to_ptr.hbm [resolvable:$true] %s1082_s15 }
  0x23   : > { %v577_v55 = vpack.c.bf16 %v523_v50, %v522_v49  ;;  %v1321_v63 = vunpack.c.l.bf16 %v1428_v58  ;;  %v1322_v0 = vunpack.c.h.bf16 %v1428_v58  ;;  %v1337_v1 = vunpack.c.l.bf16 %v1432_v59  ;;  %s1550_s16 = sshra.s32 %s1083_s15, 4  ;;  %s1551_s16 = int_to_ptr.hbm [resolvable:$true] %s1550_s16 }
  0x24   : > { %v581_v56 = vpack.c.bf16 %v531_v52, %v530_v51  ;;  %v1338_v2 = vunpack.c.h.bf16 %v1432_v59  ;;  %v1353_v3 = vunpack.c.l.bf16 %v1436_v60  ;;  %v508_v5 = vmul.f32 %v1741_v11, %v1305_v61  ;;  %s1552_s17 = scalar_lea.hbm %s1551_s16, 256  ;;  %p1557_p1 = scmp.lt.s32.totalorder %s1551_s16, %s1934_s5 }
  0x25   : > { %652 = vmatpush.bf16.msra.mxu0 %v1289_v4  ;;  %1465 = vmatpush.bf16.msra.mxu1 %v1289_v4  ;;  %v516_v7 = vmul.f32 %v1741_v11, %v1321_v63  ;;  %v517_v8 = vmul.f32 %v1741_v11, %v1322_v0  ;;  %v524_v9 = vmul.f32 %v1741_v11, %v1337_v1  ;;  %v1309_v22 = vunpack.c.l.bf16 %v1425_v18  ;;  %p1553_p12 = scmp.ne.s32.totalorder %s1551_s16, %s1552_s17  ;;  %p1558_p2 = scmp.lt.s32.totalorder %s1556_s29, %s1552_s17 }
  0x26   : > { %1466 = vmatpush.bf16.msra.mxu2 %v1289_v4  ;;  %1467 = vmatpush.bf16.msra.mxu3 %v1289_v4  ;;  %v1354_v4 = vunpack.c.h.bf16 %v1436_v60  ;;  %v525_v10 = vmul.f32 %v1741_v11, %v1338_v2  ;;  %v532_v12 = vmul.f32 %v1741_v11, %v1353_v3  ;;  %v1310_v23 = vunpack.c.h.bf16 %v1425_v18  ;;  %v1442_v18 = vld [vmem:[%s1798_s27 + $0x28] sm:$0xff]  }
  0x27   : > { %v574_v15 = vpack.c.bf16 %v517_v8, %v516_v7  ;;  %v1325_v24 = vunpack.c.l.bf16 %v1429_v19  ;;  %v1341_v26 = vunpack.c.l.bf16 %v1433_v20  ;;  %v1342_v27 = vunpack.c.h.bf16 %v1433_v20  ;;  %p1554_p13 = pnand %p1553_p12, %p1688_p4  ;;  %p1559_p3 = por %p1558_p2, %p1557_p1 }
  0x28   : > { %v533_v13 = vmul.f32 %v1741_v11, %v1354_v4  ;;  %v1357_v28 = vunpack.c.l.bf16 %v1437_v21  ;;  %v1361_v47 = vunpack.c.l.bf16 %v1360_v42  ;;  %v1377_v49 = vunpack.c.l.bf16 %v1441_v43 }
  0x29   : > { %653 = vmatpush.bf16.msra.mxu0 %v1288_v6  ;;  %1468 = vmatpush.bf16.msra.mxu1 %v1288_v6  ;;  %v526_v34 = vmul.f32 %v1741_v11, %v1341_v26  ;;  %v527_v35 = vmul.f32 %v1741_v11, %v1342_v27  ;;  %v1362_v3 = vunpack.c.h.bf16 %v1360_v42  ;;  %v1450_v42 = vld [vmem:[%s1798_s27 + $0x68] sm:$0xff]   ;;  %p1555_p0 = pneg %p1554_p13 }
  0x2a   : > { %1469 = vmatpush.bf16.msra.mxu2 %v1288_v6  ;;  %1470 = vmatpush.bf16.msra.mxu3 %v1288_v6  ;;  %v509_v6 = vmul.f32 %v1741_v11, %v1306_v62  ;;  %v582_v17 = vpack.c.bf16 %v533_v13, %v532_v12  ;;  %v534_v36 = vmul.f32 %v1741_v11, %v1357_v28 }
  0x2b   : > { %v579_v40 = vpack.c.bf16 %v527_v35, %v526_v34  ;;  %p1560_p5 = pnand %p1559_p3, %p1555_p0 }
  0x2c   : > { %v570_v14 = vpack.c.bf16 %v509_v6, %v508_v5  ;;  %v1378_v5 = vunpack.c.h.bf16 %v1441_v43 }
  0x2d   : > { %654 = vmatpush.bf16.msra.mxu0 %v1287_v16  ;;  %1471 = vmatpush.bf16.msra.mxu1 %v1287_v16 }
  0x2e   : > { %1472 = vmatpush.bf16.msra.mxu2 %v1287_v16  ;;  %1473 = vmatpush.bf16.msra.mxu3 %v1287_v16  ;;  %v578_v16 = vpack.c.bf16 %v525_v10, %v524_v9 }
  0x31   : > { %655 = vmatpush.bf16.msra.mxu0 %v1286_v25  ;;  %1474 = vmatpush.bf16.msra.mxu1 %v1286_v25 }
  0x32   : > { %1475 = vmatpush.bf16.msra.mxu2 %v1286_v25  ;;  %1476 = vmatpush.bf16.msra.mxu3 %v1286_v25  ;;  %v1326_v25 = vunpack.c.h.bf16 %v1429_v19 }
  0x34   : > { %656 = vmatmul.bf16.vlgmr.msra.gmra.mxu0 %v568_v29  ;;  %676 = vmatmul.bf16.vlgmr.msra.gmra.mxu1 %v572_v30  ;;  %v1358_v29 = vunpack.c.h.bf16 %v1437_v21  ;;  %v510_v30 = vmul.f32 %v1741_v11, %v1309_v22  ;;  %v519_v33 = vmul.f32 %v1741_v11, %v1326_v25 }
  0x35   : > { %696 = vmatmul.bf16.vlgmr.msra.gmra.mxu2 %v576_v31  ;;  %716 = vmatmul.bf16.vlgmr.msra.gmra.mxu3 %v580_v32  ;;  %v511_v31 = vmul.f32 %v1741_v11, %v1310_v23  ;;  %v518_v32 = vmul.f32 %v1741_v11, %v1325_v24 }
  0x36   : > { %v535_v37 = vmul.f32 %v1741_v11, %v1358_v29  ;;  %v1803_v11 = vld [vmem:[%s1932_s3] ss:$0 sm:$0xff] }
  0x37   : > { %v571_v38 = vpack.c.bf16 %v511_v31, %v510_v30  ;;  %v575_v39 = vpack.c.bf16 %v519_v33, %v518_v32  ;;  %v1381_v32 = vunpack.c.l.bf16 %v1442_v18 }
  0x38   : > { %v583_v41 = vpack.c.bf16 %v535_v37, %v534_v36 }
  0x44   : > { %661 = vmatmul.bf16.gmra.mxu0 %v569_v53  ;;  %681 = vmatmul.bf16.gmra.mxu1 %v573_v54  ;;  %v1445_v54 = vld [vmem:[%s1798_s27 + $0x40] sm:$0xff]  }
  0x45   : > { %701 = vmatmul.bf16.gmra.mxu2 %v577_v55  ;;  %721 = vmatmul.bf16.gmra.mxu3 %v581_v56  ;;  %v1449_v55 = vld [vmem:[%s1798_s27 + $0x60] sm:$0xff]   ;;  %v1393_v61 = vunpack.c.l.bf16 %v1445_v54  ;;  %v1394_v24 = vunpack.c.h.bf16 %v1445_v54 }
  0x46   : > { %v1409_v63 = vunpack.c.l.bf16 %v1449_v55  ;;  %v1410_v26 = vunpack.c.h.bf16 %v1449_v55 }
  0x54   : > { %666 = vmatmul.bf16.gmra.mxu0 %v570_v14  ;;  %686 = vmatmul.bf16.gmra.mxu1 %v574_v15 }
  0x55   : > { %706 = vmatmul.bf16.gmra.mxu2 %v578_v16  ;;  %726 = vmatmul.bf16.gmra.mxu3 %v582_v17  ;;  %v1438_v17 = vld [vmem:[%s1798_s27 + $0x8] sm:$0xff]  }
  0x56   : > { %v1365_v30 = vunpack.c.l.bf16 %v1438_v17 }
  0x64   : > { %671 = vmatmul.bf16.gmra.mxu0 %v571_v38  ;;  %691 = vmatmul.bf16.gmra.mxu1 %v575_v39 }
  0x65   : > { %711 = vmatmul.bf16.gmra.mxu2 %v579_v40  ;;  %731 = vmatmul.bf16.gmra.mxu3 %v583_v41  ;;  %v1446_v41 = vld [vmem:[%s1798_s27 + $0x48] sm:$0xff]  }
  0xb1   : > { %v657_v44 = vpop.f32.mrf.mxu0  ;;  %v677_v45 = vpop.f32.mrf.mxu1 }
  0xb2   : > { %v840_v46 = vadd.f32 %v1803_v11, %v657_v44  ;;  %v848_v48 = vadd.f32 %v1803_v11, %v677_v45 }
  0xb4   : > { %v872_v50 = vmax.f32 %v840_v46, 0.0  ;;  %v880_v51 = vmax.f32 %v848_v48, 0.0 }
  0xb6   : > { %v968_v52 = vadd.f32 %v1361_v47, %v872_v50  ;;  %v976_v53 = vadd.f32 %v1377_v49, %v880_v51  ;;  %v1397_v50 = vunpack.c.l.bf16 %v1446_v41 }
  0xb8   : > { %v1000_v56 = vmax.f32 %v968_v52, 0.0  ;;  %v1008_v57 = vmax.f32 %v976_v53, 0.0  ;;  %v697_v58 = vpop.f32.mrf.mxu2  ;;  %v717_v59 = vpop.f32.mrf.mxu3  ;;  %v1413_v52 = vunpack.c.l.bf16 %v1450_v42 }
  0xb9   : > { %v856_v60 = vadd.f32 %v1803_v11, %v697_v58  ;;  %v864_v62 = vadd.f32 %v1803_v11, %v717_v59  ;;  %v659_v0 = vpop.f32.mrf.mxu0  ;;  %v679_v1 = vpop.f32.mrf.mxu1  ;;  %v1382_v58 = vunpack.c.h.bf16 %v1442_v18 }
  0xba   : > { %1032 = vst [vmem:[%s1816_s25] sm:$0xff] %v1000_v56  ;;  %v841_v2 = vadd.f32 %v1803_v11, %v659_v0  ;;  %v849_v4 = vadd.f32 %v1803_v11, %v679_v1  ;;  %v1366_v56 = vunpack.c.h.bf16 %v1438_v17 }
  0xbb   : > { %1040 = vst [vmem:[%s1816_s25 + $0x40] sm:$0xff] %v1008_v57  ;;  %v888_v6 = vmax.f32 %v856_v60, 0.0  ;;  %v896_v7 = vmax.f32 %v864_v62, 0.0 }
  0xbc   : > { %v873_v8 = vmax.f32 %v841_v2, 0.0  ;;  %v881_v9 = vmax.f32 %v849_v4, 0.0 }
  0xbd   : > { %v984_v10 = vadd.f32 %v1393_v61, %v888_v6  ;;  %v992_v12 = vadd.f32 %v1409_v63, %v896_v7  ;;  %v1443_v6 = vld [vmem:[%s1798_s27 + $0x30] sm:$0xff]  }
  0xbe   : > { %v969_v13 = vadd.f32 %v1362_v3, %v873_v8  ;;  %v977_v14 = vadd.f32 %v1378_v5, %v881_v9  ;;  %v1439_v5 = vld [vmem:[%s1798_s27 + $0x10] sm:$0xff]  }
  0xbf   : > { %v1016_v15 = vmax.f32 %v984_v10, 0.0  ;;  %v1024_v16 = vmax.f32 %v992_v12, 0.0 }
  0xc0   : > { %v1001_v19 = vmax.f32 %v969_v13, 0.0  ;;  %v1009_v20 = vmax.f32 %v977_v14, 0.0  ;;  %v699_v21 = vpop.f32.mrf.mxu2  ;;  %v719_v22 = vpop.f32.mrf.mxu3  ;;  %v1398_v13 = vunpack.c.h.bf16 %v1446_v41 }
  0xc1   : > { %1048 = vst [vmem:[%s1816_s25 + $0x80] sm:$0xff] %v1016_v15  ;;  %v857_v23 = vadd.f32 %v1803_v11, %v699_v21  ;;  %v865_v25 = vadd.f32 %v1803_v11, %v719_v22  ;;  %v662_v27 = vpop.f32.mrf.mxu0  ;;  %v682_v28 = vpop.f32.mrf.mxu1  ;;  %v1414_v15 = vunpack.c.h.bf16 %v1450_v42  ;;  %v1385_v21 = vunpack.c.l.bf16 %v1443_v6 }
  0xc2   : > { %1056 = vst [vmem:[%s1816_s25 + $0xc0] sm:$0xff] %v1024_v16  ;;  %v842_v29 = vadd.f32 %v1803_v11, %v662_v27  ;;  %v850_v31 = vadd.f32 %v1803_v11, %v682_v28 }
  0xc3   : > { %1033 = vst [vmem:[%s1816_s25 + $0x8] sm:$0xff] %v1001_v19  ;;  %v889_v33 = vmax.f32 %v857_v23, 0.0  ;;  %v897_v34 = vmax.f32 %v865_v25, 0.0  ;;  %v1369_v19 = vunpack.c.l.bf16 %v1439_v5 }
  0xc4   : > { %1041 = vst [vmem:[%s1816_s25 + $0x48] sm:$0xff] %v1009_v20  ;;  %v874_v35 = vmax.f32 %v842_v29, 0.0  ;;  %v882_v36 = vmax.f32 %v850_v31, 0.0  ;;  %v1451_v31 = vld [vmem:[%s1798_s27 + $0x70] sm:$0xff]  }
  0xc5   : > { %v985_v37 = vadd.f32 %v1394_v24, %v889_v33  ;;  %v993_v38 = vadd.f32 %v1410_v26, %v897_v34  ;;  %v1417_v41 = vunpack.c.l.bf16 %v1451_v31 }
  0xc6   : > { %v970_v39 = vadd.f32 %v1365_v30, %v874_v35  ;;  %v978_v40 = vadd.f32 %v1381_v32, %v882_v36  ;;  %v1447_v30 = vld [vmem:[%s1798_s27 + $0x50] sm:$0xff]  }
  0xc7   : > { %v1017_v43 = vmax.f32 %v985_v37, 0.0  ;;  %v1025_v44 = vmax.f32 %v993_v38, 0.0 }
  0xc8   : > { %v1002_v45 = vmax.f32 %v970_v39, 0.0  ;;  %v1010_v46 = vmax.f32 %v978_v40, 0.0  ;;  %v702_v47 = vpop.f32.mrf.mxu2  ;;  %v722_v48 = vpop.f32.mrf.mxu3  ;;  %v1401_v39 = vunpack.c.l.bf16 %v1447_v30 }
  0xc9   : > { %1049 = vst [vmem:[%s1816_s25 + $0x88] sm:$0xff] %v1017_v43  ;;  %v858_v49 = vadd.f32 %v1803_v11, %v702_v47  ;;  %v866_v51 = vadd.f32 %v1803_v11, %v722_v48  ;;  %v664_v53 = vpop.f32.mrf.mxu0  ;;  %v684_v54 = vpop.f32.mrf.mxu1  ;;  %v1386_v47 = vunpack.c.h.bf16 %v1443_v6 }
  0xca   : > { %1057 = vst [vmem:[%s1816_s25 + $0xc8] sm:$0xff] %v1025_v44  ;;  %v843_v55 = vadd.f32 %v1803_v11, %v664_v53  ;;  %v851_v57 = vadd.f32 %v1803_v11, %v684_v54 }
  0xcb   : > { %1034 = vst [vmem:[%s1816_s25 + $0x10] sm:$0xff] %v1002_v45  ;;  %v890_v59 = vmax.f32 %v858_v49, 0.0  ;;  %v898_v60 = vmax.f32 %v866_v51, 0.0  ;;  %v1370_v45 = vunpack.c.h.bf16 %v1439_v5 }
  0xcc   : > { %1042 = vst [vmem:[%s1816_s25 + $0x50] sm:$0xff] %v1010_v46  ;;  %v875_v61 = vmax.f32 %v843_v55, 0.0  ;;  %v883_v62 = vmax.f32 %v851_v57, 0.0 }
  0xcd   : > { %v986_v63 = vadd.f32 %v1397_v50, %v890_v59  ;;  %v994_v0 = vadd.f32 %v1413_v52, %v898_v60  ;;  %v1444_v59 = vld [vmem:[%s1798_s27 + $0x38] sm:$0xff]  }
  0xce   : > { %v971_v1 = vadd.f32 %v1366_v56, %v875_v61  ;;  %v979_v2 = vadd.f32 %v1382_v58, %v883_v62  ;;  %v1440_v58 = vld [vmem:[%s1798_s27 + $0x18] sm:$0xff]  }
  0xcf   : > { %v1018_v3 = vmax.f32 %v986_v63, 0.0  ;;  %v1026_v4 = vmax.f32 %v994_v0, 0.0 }
  0xd0   : > { %v1003_v7 = vmax.f32 %v971_v1, 0.0  ;;  %v1011_v8 = vmax.f32 %v979_v2, 0.0  ;;  %v704_v9 = vpop.f32.mrf.mxu2  ;;  %v724_v10 = vpop.f32.mrf.mxu3  ;;  %v1402_v1 = vunpack.c.h.bf16 %v1447_v30 }
  0xd1   : > { %1050 = vst [vmem:[%s1816_s25 + $0x90] sm:$0xff] %v1018_v3  ;;  %v859_v12 = vadd.f32 %v1803_v11, %v704_v9  ;;  %v867_v14 = vadd.f32 %v1803_v11, %v724_v10  ;;  %v667_v16 = vpop.f32.mrf.mxu0  ;;  %v687_v17 = vpop.f32.mrf.mxu1  ;;  %v1418_v3 = vunpack.c.h.bf16 %v1451_v31  ;;  %v1389_v9 = vunpack.c.l.bf16 %v1444_v59 }
  0xd2   : > { %1058 = vst [vmem:[%s1816_s25 + $0xd0] sm:$0xff] %v1026_v4  ;;  %v844_v18 = vadd.f32 %v1803_v11, %v667_v16  ;;  %v852_v20 = vadd.f32 %v1803_v11, %v687_v17 }
  0xd3   : > { %1035 = vst [vmem:[%s1816_s25 + $0x18] sm:$0xff] %v1003_v7  ;;  %v891_v22 = vmax.f32 %v859_v12, 0.0  ;;  %v899_v23 = vmax.f32 %v867_v14, 0.0  ;;  %v1373_v7 = vunpack.c.l.bf16 %v1440_v58 }
  0xd4   : > { %1043 = vst [vmem:[%s1816_s25 + $0x58] sm:$0xff] %v1011_v8  ;;  %v876_v24 = vmax.f32 %v844_v18, 0.0  ;;  %v884_v25 = vmax.f32 %v852_v20, 0.0  ;;  %v1452_v20 = vld [vmem:[%s1798_s27 + $0x78] sm:$0xff]  }
  0xd5   : > { %v987_v26 = vadd.f32 %v1398_v13, %v891_v22  ;;  %v995_v27 = vadd.f32 %v1414_v15, %v899_v23  ;;  %v1421_v30 = vunpack.c.l.bf16 %v1452_v20 }
  0xd6   : > { %v972_v28 = vadd.f32 %v1369_v19, %v876_v24  ;;  %v980_v29 = vadd.f32 %v1385_v21, %v884_v25  ;;  %v1448_v19 = vld [vmem:[%s1798_s27 + $0x58] sm:$0xff]  }
  0xd7   : > { %v1019_v32 = vmax.f32 %v987_v26, 0.0  ;;  %v1027_v33 = vmax.f32 %v995_v27, 0.0 }
  0xd8   : > { %v1004_v34 = vmax.f32 %v972_v28, 0.0  ;;  %v1012_v35 = vmax.f32 %v980_v29, 0.0  ;;  %v707_v36 = vpop.f32.mrf.mxu2  ;;  %v727_v37 = vpop.f32.mrf.mxu3  ;;  %v1405_v28 = vunpack.c.l.bf16 %v1448_v19 }
  0xd9   : > { %1051 = vst [vmem:[%s1816_s25 + $0x98] sm:$0xff] %v1019_v32  ;;  %v860_v38 = vadd.f32 %v1803_v11, %v707_v36  ;;  %v868_v40 = vadd.f32 %v1803_v11, %v727_v37  ;;  %v669_v42 = vpop.f32.mrf.mxu0  ;;  %v689_v43 = vpop.f32.mrf.mxu1  ;;  %v1390_v36 = vunpack.c.h.bf16 %v1444_v59 }
  0xda   : > { %1059 = vst [vmem:[%s1816_s25 + $0xd8] sm:$0xff] %v1027_v33  ;;  %v845_v44 = vadd.f32 %v1803_v11, %v669_v42  ;;  %v853_v46 = vadd.f32 %v1803_v11, %v689_v43 }
  0xdb   : > { %1036 = vst [vmem:[%s1816_s25 + $0x20] sm:$0xff] %v1004_v34  ;;  %v892_v48 = vmax.f32 %v860_v38, 0.0  ;;  %v900_v49 = vmax.f32 %v868_v40, 0.0  ;;  %v1374_v34 = vunpack.c.h.bf16 %v1440_v58 }
  0xdc   : > { %1044 = vst [vmem:[%s1816_s25 + $0x60] sm:$0xff] %v1012_v35  ;;  %v877_v50 = vmax.f32 %v845_v44, 0.0  ;;  %v885_v51 = vmax.f32 %v853_v46, 0.0 }
  0xdd   : > { %v988_v52 = vadd.f32 %v1401_v39, %v892_v48  ;;  %v996_v53 = vadd.f32 %v1417_v41, %v900_v49 }
  0xde   : > { %v973_v54 = vadd.f32 %v1370_v45, %v877_v50  ;;  %v981_v55 = vadd.f32 %v1386_v47, %v885_v51 }
  0xdf   : > { %v1020_v56 = vmax.f32 %v988_v52, 0.0  ;;  %v1028_v57 = vmax.f32 %v996_v53, 0.0  ;;  %v1406_v52 = vunpack.c.h.bf16 %v1448_v19 }
  0xe0   : > { %v1005_v60 = vmax.f32 %v973_v54, 0.0  ;;  %v1013_v61 = vmax.f32 %v981_v55, 0.0  ;;  %v709_v62 = vpop.f32.mrf.mxu2  ;;  %v729_v63 = vpop.f32.mrf.mxu3  ;;  %v1422_v54 = vunpack.c.h.bf16 %v1452_v20 }
  0xe1   : > { %1052 = vst [vmem:[%s1816_s25 + $0xa0] sm:$0xff] %v1020_v56  ;;  %v861_v0 = vadd.f32 %v1803_v11, %v709_v62  ;;  %v869_v2 = vadd.f32 %v1803_v11, %v729_v63  ;;  %v672_v4 = vpop.f32.mrf.mxu0  ;;  %v692_v5 = vpop.f32.mrf.mxu1 }
  0xe2   : > { %1060 = vst [vmem:[%s1816_s25 + $0xe0] sm:$0xff] %v1028_v57  ;;  %v846_v6 = vadd.f32 %v1803_v11, %v672_v4  ;;  %v854_v8 = vadd.f32 %v1803_v11, %v692_v5 }
  0xe3   : > { %1037 = vst [vmem:[%s1816_s25 + $0x28] sm:$0xff] %v1005_v60  ;;  %v893_v10 = vmax.f32 %v861_v0, 0.0  ;;  %v901_v12 = vmax.f32 %v869_v2, 0.0 }
  0xe4   : > { %1045 = vst [vmem:[%s1816_s25 + $0x68] sm:$0xff] %v1013_v61  ;;  %v878_v13 = vmax.f32 %v846_v6, 0.0  ;;  %v886_v14 = vmax.f32 %v854_v8, 0.0 }
  0xe5   : > { %v989_v15 = vadd.f32 %v1402_v1, %v893_v10  ;;  %v997_v16 = vadd.f32 %v1418_v3, %v901_v12 }
  0xe6   : > { %v974_v17 = vadd.f32 %v1373_v7, %v878_v13  ;;  %v982_v18 = vadd.f32 %v1389_v9, %v886_v14 }
  0xe7   : > { %v1021_v21 = vmax.f32 %v989_v15, 0.0  ;;  %v1029_v22 = vmax.f32 %v997_v16, 0.0 }
  0xe8   : > { %v1006_v23 = vmax.f32 %v974_v17, 0.0  ;;  %v1014_v24 = vmax.f32 %v982_v18, 0.0  ;;  %v712_v25 = vpop.f32.mrf.mxu2  ;;  %v732_v26 = vpop.f32.mrf.mxu3 }
  0xe9   : > { %1053 = vst [vmem:[%s1816_s25 + $0xa8] sm:$0xff] %v1021_v21  ;;  %v862_v27 = vadd.f32 %v1803_v11, %v712_v25  ;;  %v870_v29 = vadd.f32 %v1803_v11, %v732_v26  ;;  %v674_v31 = vpop.f32.mrf.mxu0  ;;  %v694_v32 = vpop.f32.mrf.mxu1 }
  0xea   : > { %1061 = vst [vmem:[%s1816_s25 + $0xe8] sm:$0xff] %v1029_v22  ;;  %v847_v33 = vadd.f32 %v1803_v11, %v674_v31  ;;  %v855_v35 = vadd.f32 %v1803_v11, %v694_v32 }
  0xeb   : > { %1038 = vst [vmem:[%s1816_s25 + $0x30] sm:$0xff] %v1006_v23  ;;  %v894_v37 = vmax.f32 %v862_v27, 0.0  ;;  %v902_v38 = vmax.f32 %v870_v29, 0.0 }
  0xec   : > { %1046 = vst [vmem:[%s1816_s25 + $0x70] sm:$0xff] %v1014_v24  ;;  %v879_v39 = vmax.f32 %v847_v33, 0.0  ;;  %v887_v40 = vmax.f32 %v855_v35, 0.0 }
  0xed   : > { %v990_v41 = vadd.f32 %v1405_v28, %v894_v37  ;;  %v998_v42 = vadd.f32 %v1421_v30, %v902_v38 }
  0xee   : > { %v975_v43 = vadd.f32 %v1374_v34, %v879_v39  ;;  %v983_v44 = vadd.f32 %v1390_v36, %v887_v40 }
  0xef   : > { %v1022_v45 = vmax.f32 %v990_v41, 0.0  ;;  %v1030_v46 = vmax.f32 %v998_v42, 0.0 }
  0xf0   : > { %v1007_v47 = vmax.f32 %v975_v43, 0.0  ;;  %v1015_v48 = vmax.f32 %v983_v44, 0.0  ;;  %v714_v49 = vpop.f32.mrf.mxu2  ;;  %v734_v50 = vpop.f32.mrf.mxu3 }
  0xf1   : > { %1054 = vst [vmem:[%s1816_s25 + $0xb0] sm:$0xff] %v1022_v45  ;;  %v863_v51 = vadd.f32 %v1803_v11, %v714_v49  ;;  %v871_v53 = vadd.f32 %v1803_v11, %v734_v50 }
  0xf2   : > { %1062 = vst [vmem:[%s1816_s25 + $0xf0] sm:$0xff] %v1030_v46 }
  0xf3   : > { %1039 = vst [vmem:[%s1816_s25 + $0x38] sm:$0xff] %v1007_v47  ;;  %v895_v55 = vmax.f32 %v863_v51, 0.0  ;;  %v903_v56 = vmax.f32 %v871_v53, 0.0 }
  0xf4   : > { %1047 = vst [vmem:[%s1816_s25 + $0x78] sm:$0xff] %v1015_v48 }
  0xf5   : > { %v991_v57 = vadd.f32 %v1406_v52, %v895_v55  ;;  %v999_v58 = vadd.f32 %v1422_v54, %v903_v56 }
  0xf7   : > { %v1023_v59 = vmax.f32 %v991_v57, 0.0  ;;  %v1031_v11 = vmax.f32 %v999_v58, 0.0 }
  0xf9   : > { %1055 = vst [vmem:[%s1816_s25 + $0xb8] sm:$0xff] %v1023_v59 }
  0xfa   : > { %1063 = vst [vmem:[%s1816_s25 + $0xf8] sm:$0xff] %v1031_v11 }
  0xfb   : > { %1563 = shalt.err (!%p1560_p5)
}
  0xfc   : > { %s1616_s8 = smov 128   ;;  %s1617_s25 = smov 8  }
  0xfd   : > { %1477 = dma.vmem_to_hbm [thread:$0]  (%p1688_p4), %s1081_s13, 4096, %s1083_s15, %s1065_s14, %s1616_s8, %s1616_s8, %s1617_s25  }
  0xfe PF: > { %p1483_p6 = scmp.ge.s32.totalorder %s1614_s23, 2  ;;  %s1097_s9 = sand.u32 1, %s1594_s18  }
  0xff   : > { %s1098_s10 = scalar_lea.sflag [#allocation4], %s1097_s9 }
 0x100   : > { %p1480_p7 = pnand %p1483_p6, %p1695_p8 }
 0x102   : > { %p1481_p9 = pneg %p1480_p7 }
 0x104   : > { %1589 = dma.done.wait (%p1481_p9), %s1098_s10, 4096  }
 0x105   : > { %1591 = vsyncadd (%p1481_p9), %s1098_s10, 4294963200  ;;  %s18_s23 = sadd.s32 1, %s1614_s23   ;;  %s1937_s18 = smov %s1598_s19 }
 0x106   : > { %p15_p10 = scmp.ge.s32.totalorder %s18_s23, 4   ;;  %s1938_s19 = smov %s1602_s20 }
 0x107   : > { %s1939_s20 = smov %s1701_s6  ;;  %s1940_s21 = smov %s1610_s22 }
 0x108   : > { %s1941_s22 = smov %s1943_s26  ;;  %17 = sbr.rel (!%p15_p10) target bundleno = 4 (0x4), region = 95 }
 0x10d   :  { %1104 = vsyncpa [#allocation4], 1 }
 0x10e   :  { %1106 = vsyncpa [#allocation4 + $0x1], 1 }

</bundles_post_ra>
